<compile_context>
chip_gen: v7x
topology: tpu7x:2x2x1
jax: 0.10.0
libtpu: 0.0.40
codegen_flags: <defaults>
</compile_context>

<pallas_src>
import jax
import jax.numpy as jnp
from jax import lax
from jax.experimental import pallas as pl
from jax.experimental.pallas import tpu as pltpu

RECURRENT_DTYPE = jnp.float32   # flip to jnp.bfloat16 on v6e/v7x after tolerance validation


def _make_kernel(T: int, Bp: int, H: int):
    G = 4 * H      # per-direction gate width, PyTorch order [i | f | g | o]
    G2 = 8 * H     # merged gate width, gate-major: [i_f i_b | f_f f_b | g_f g_b | o_f o_b]

    def predictor_kernel(xx_ref,                        # (T*Bp, 2D)  row block s = [x_s | x_{T-1-s}]
                         wih0_ref, whh0_ref, b0_ref,    # (2D,8H) (2H,8H) (1,8H)  block-diag, gate-major
                         wih1_ref, whh1_ref, b1_ref,    # (2H,8H) (H,8H) (1,8H)   [fwd 4H | bwd 4H]
                         wfc1_ref, bfc1_ref,            # (2H,64) (1,64)
                         wfc2_ref, bfc2_ref,            # (64,1)  (1,1)
                         out_ref):                      # (Bp, 1)
        f32 = jnp.float32

        # ---- hoisted per-lane activation constants: sigmoid(x) = 0.5*tanh(x/2) + 0.5 ----
        # layer-0 merged gate-major layout: the tanh 'g' gate occupies lanes [4H, 6H)
        lane_m = lax.broadcasted_iota(jnp.int32, (1, G2), 1)
        isg_m = (lane_m >= 4 * H) & (lane_m < 6 * H)
        sc_m = jnp.where(isg_m, 1.0, 0.5).astype(f32)
        of_m = jnp.where(isg_m, 0.0, 0.5).astype(f32)
        # layer-1 single-direction layout [i f g o]: 'g' gate occupies lanes [2H, 3H)
        lane_1 = lax.broadcasted_iota(jnp.int32, (1, G), 1)
        isg_1 = (lane_1 >= 2 * H) & (lane_1 < 3 * H)
        sc_1 = jnp.where(isg_1, 1.0, 0.5).astype(f32)
        of_1 = jnp.where(isg_1, 0.0, 0.5).astype(f32)

        # ---- weights read from VMEM once, outside all loops ----
        whh0 = whh0_ref[...].astype(RECURRENT_DTYPE)    # (2H, 8H) block-diagonal, gate-major
        wih1f = wih1_ref[0:H, :]                        # (H, 8H)  rows fed by hf
        wih1b = wih1_ref[H:2 * H, :]                    # (H, 8H)  rows fed by hb
        whh1f = whh1_ref[:, 0:G].astype(RECURRENT_DTYPE)
        whh1b = whh1_ref[:, G:G2].astype(RECURRENT_DTYPE)
        b1f = b1_ref[:, 0:G]
        b1b = b1_ref[:, G:G2]

        # ---- layer 0: ONE input-projection GEMM for all timesteps & both directions ----
        g0 = jnp.dot(xx_ref[...], wih0_ref[...],
                     preferred_element_type=f32) + b0_ref[...]           # (T*Bp, 8H)

        zeros2 = jnp.zeros((Bp, 2 * H), f32)
        h0, c0 = zeros2, zeros2                                          # merged state [hf | hb]
        g1 = [None] * T          # layer-1 gate pre-activations, accumulated on the fly

        def acc(idx, val):
            g1[idx] = val if g1[idx] is None else g1[idx] + val

        # Fused fwd+bwd recurrence, fully unrolled: all slices static & vreg-aligned.
        for s in range(T):
            tb = T - 1 - s
            gates = (g0[s * Bp:(s + 1) * Bp, :]
                     + jnp.dot(h0.astype(RECURRENT_DTYPE), whh0,
                               preferred_element_type=f32))              # (Bp, 8H)
            a = jnp.tanh(gates * sc_m) * sc_m + of_m                     # one fused activation slab
            i = a[:, 0:2 * H]
            f = a[:, 2 * H:4 * H]
            g = a[:, 4 * H:6 * H]
            o = a[:, 6 * H:8 * H]
            c0 = f * c0 + i * g
            h0 = o * jnp.tanh(c0)
            # folded layer-1 input projection: rides in MXU slack of the latency-bound loop
            acc(s, jnp.dot(h0[:, 0:H], wih1f, preferred_element_type=f32))
            acc(tb, jnp.dot(h0[:, H:2 * H], wih1b, preferred_element_type=f32))

        # ---- layer 1 ----
        def cell1(g_pre, h, c, whh_t):
            gates = g_pre + jnp.dot(h.astype(RECURRENT_DTYPE), whh_t,
                                    preferred_element_type=f32)
            a = jnp.tanh(gates * sc_1) * sc_1 + of_1
            i = a[:, 0:H]
            f = a[:, H:2 * H]
            g = a[:, 2 * H:3 * H]
            o = a[:, 3 * H:4 * H]
            c_new = f * c + i * g
            return o * jnp.tanh(c_new), c_new

        zeros1 = jnp.zeros((Bp, H), f32)
        h1f, c1f = zeros1, zeros1
        for t in range(T):                     # forward chain: only the final h is needed
            h1f, c1f = cell1(g1[t][:, 0:G] + b1f, h1f, c1f, whh1f)
        # backward direction at t = T-1 is its FIRST step (zero initial state)
        h1b, _ = cell1(g1[T - 1][:, G:G2] + b1b, zeros1, zeros1, whh1b)

        # ---- head: Linear(2H,64) -> ReLU -> Linear(64,1) -> sigmoid (split matmul, no concat) ----
        hidden = (jnp.dot(h1f, wfc1_ref[0:H, :], preferred_element_type=f32)
                  + jnp.dot(h1b, wfc1_ref[H:2 * H, :], preferred_element_type=f32)
                  + bfc1_ref[...])
        hidden = jnp.maximum(hidden, 0.0)
        logits = jnp.dot(hidden, wfc2_ref[...], preferred_element_type=f32) + bfc2_ref[...]
        out_ref[...] = jax.nn.sigmoid(logits)

    return predictor_kernel


def init_params(key, input_size: int, hidden_size: int, output_size: int = 1):
    """Deterministic PyTorch-style init (uniform +-1/sqrt(fan)), natural packed slabs."""
    H = hidden_size
    keys = iter(jax.random.split(key, 32))

    def u(shape, bound):
        return jax.random.uniform(next(keys), shape, jnp.float32, -bound, bound)

    k_lstm = 1.0 / (H ** 0.5)

    def lstm_dir(in_dim):
        w_ih = u((4 * H, in_dim), k_lstm)
        w_hh = u((4 * H, H), k_lstm)
        b_ih = u((4 * H,), k_lstm)
        b_hh = u((4 * H,), k_lstm)
        return w_ih.T, w_hh.T, (b_ih + b_hh).reshape(1, 4 * H)

    wih0f, whh0f, b0f = lstm_dir(input_size)
    wih0b, whh0b, b0b = lstm_dir(input_size)
    wih1f, whh1f, b1f = lstm_dir(2 * H)
    wih1b, whh1b, b1b = lstm_dir(2 * H)

    wih0 = jnp.concatenate([wih0f, wih0b], axis=1)      # (D, 8H)   [fwd | bwd]
    whh0 = jnp.concatenate([whh0f, whh0b], axis=1)      # (H, 8H)
    b0 = jnp.concatenate([b0f, b0b], axis=1)            # (1, 8H)
    wih1 = jnp.concatenate([wih1f, wih1b], axis=1)      # (2H, 8H)
    whh1 = jnp.concatenate([whh1f, whh1b], axis=1)      # (H, 8H)
    b1 = jnp.concatenate([b1f, b1b], axis=1)            # (1, 8H)

    k1 = 1.0 / ((2 * H) ** 0.5)
    wfc1 = u((64, 2 * H), k1).T                         # (2H, 64)
    bfc1 = u((64,), k1).reshape(1, 64)
    k2 = 1.0 / (64 ** 0.5)
    wfc2 = u((output_size, 64), k2).T                   # (64, 1)
    bfc2 = u((output_size,), k2).reshape(1, output_size)

    return (wih0, whh0, b0, wih1, whh1, b1, wfc1, bfc1, wfc2, bfc2)


def _gate_major(wf, wb, H):
    """Interleave per-gate column blocks -> [i_f i_b | f_f f_b | g_f g_b | o_f o_b]."""
    parts = []
    for j in range(4):
        parts.append(wf[..., j * H:(j + 1) * H])
        parts.append(wb[..., j * H:(j + 1) * H])
    return jnp.concatenate(parts, axis=-1)


def _pack_kernel_params(params, H, D):
    """Repack natural slabs into the kernel's block-diagonal / gate-major layout (layout plumbing)."""
    (wih0, whh0, b0, wih1, whh1, b1, wfc1, bfc1, wfc2, bfc2) = [
        jnp.asarray(p, jnp.float32) for p in params]
    G = 4 * H
    zd = jnp.zeros((D, G), jnp.float32)
    zh = jnp.zeros((H, G), jnp.float32)
    # layer-0 input projection: block-diagonal over the [x_t | x_{T-1-t}] input columns
    wih0_blk = jnp.concatenate([_gate_major(wih0[:, :G], zd, H),
                                _gate_major(zd, wih0[:, G:], H)], axis=0)      # (2D, 8H)
    # layer-0 recurrence: block-diagonal over the merged state [hf | hb]
    whh0_blk = jnp.concatenate([_gate_major(whh0[:, :G], zh, H),
                                _gate_major(zh, whh0[:, G:], H)], axis=0)      # (2H, 8H)
    b0_m = _gate_major(b0[:, :G], b0[:, G:], H)                                # (1, 8H)
    return (wih0_blk, whh0_blk, b0_m, wih1, whh1, b1, wfc1, bfc1, wfc2, bfc2)


def predictor_forward(x, params, hidden_size: int, output_size: int = 1):
    """x: (B, T, D) batch_first float32, like the PyTorch module (eval-mode semantics)."""
    B, T, D = x.shape
    H = hidden_size
    Bp = max(((B + 7) // 8) * 8, 8)   # pad batch to a sublane multiple (unmasked tile accesses)

    x_tm = jnp.transpose(x, (1, 0, 2)).astype(jnp.float32)          # (T, B, D) time-major
    x_tm = jnp.pad(x_tm, ((0, 0), (0, Bp - B), (0, 0)))             # (T, Bp, D)
    # per time-block s: [x at time s | x at time T-1-s] -> one block-diag GEMM feeds both chains
    xx = jnp.concatenate([x_tm, x_tm[::-1]], axis=-1).reshape(T * Bp, 2 * D)

    ins = [xx] + list(_pack_kernel_params(params, H, D))

    kernel = _make_kernel(T, Bp, H)
    out = pl.pallas_call(
        kernel,
        out_shape=jax.ShapeDtypeStruct((Bp, output_size), jnp.float32),
        in_specs=[pl.BlockSpec(memory_space=pltpu.MemorySpace.VMEM)] * len(ins),
        out_specs=pl.BlockSpec(memory_space=pltpu.MemorySpace.VMEM),
    )(*ins)
    return out[:B]


def reference_forward(x, params, hidden_size: int):
    """Pure-JAX reference with identical math (eval-mode dropout = identity)."""
    H = hidden_size
    G = 4 * H
    (wih0, whh0, b0, wih1, whh1, b1, wfc1, bfc1, wfc2, bfc2) = params

    def cell(x_t, h, c, wih_t, whh_t, b):
        gates = x_t @ wih_t + h @ whh_t + b
        i = jax.nn.sigmoid(gates[:, 0 * H:1 * H])
        f = jax.nn.sigmoid(gates[:, 1 * H:2 * H])
        g = jnp.tanh(gates[:, 2 * H:3 * H])
        o = jax.nn.sigmoid(gates[:, 3 * H:4 * H])
        c = f * c + i * g
        h = o * jnp.tanh(c)
        return h, c

    def run_dir(xs_tm, wih_t, whh_t, b, reverse):
        B = xs_tm.shape[1]
        z = jnp.zeros((B, H), jnp.float32)

        def step(carry, x_t):
            h, c = carry
            h, c = cell(x_t, h, c, wih_t, whh_t, b)
            return (h, c), h
        _, hs = lax.scan(step, (z, z), xs_tm, reverse=reverse)
        return hs  # (T, B, H), aligned to original time order

    x_tm = jnp.transpose(x, (1, 0, 2)).astype(jnp.float32)
    l0 = jnp.concatenate([run_dir(x_tm, wih0[:, :G], whh0[:, :G], b0[:, :G], False),
                          run_dir(x_tm, wih0[:, G:], whh0[:, G:], b0[:, G:], True)], axis=-1)
    l1 = jnp.concatenate([run_dir(l0, wih1[:, :G], whh1[:, :G], b1[:, :G], False),
                          run_dir(l0, wih1[:, G:], whh1[:, G:], b1[:, G:], True)], axis=-1)
    last = l1[-1]                                                   # == out[:, -1, :]
    hidden = jnp.maximum(last @ wfc1 + bfc1, 0.0)
    return jax.nn.sigmoid(hidden @ wfc2 + bfc2)


if __name__ == "__main__":
    B, T, INPUT_SIZE, HIDDEN_SIZE, OUTPUT_SIZE = 2, 8, 8, 32, 1

    key = jax.random.PRNGKey(0)
    k_x, k_p = jax.random.split(key)
    x = jax.random.normal(k_x, (B, T, INPUT_SIZE), jnp.float32)
    params = init_params(k_p, INPUT_SIZE, HIDDEN_SIZE, OUTPUT_SIZE)

    out = predictor_forward(x, params, HIDDEN_SIZE, OUTPUT_SIZE)
    out = jax.block_until_ready(out)

    ref = jax.block_until_ready(reference_forward(x, params, HIDDEN_SIZE))
    assert out.shape == (B, OUTPUT_SIZE)
    assert jnp.allclose(out, ref, atol=1e-3, rtol=1e-3), (out, ref)

    print("KERNEL_OK")
</pallas_src>

<mosaic_0001>
module attributes {stable_mosaic.version = 11 : i64} {
  func.func @predictor_kernel(%arg0: memref<64x16xf32, #tpu.memory_space<vmem>>, %arg1: memref<16x256xf32, #tpu.memory_space<vmem>>, %arg2: memref<64x256xf32, #tpu.memory_space<vmem>>, %arg3: memref<1x256xf32, #tpu.memory_space<vmem>>, %arg4: memref<64x256xf32, #tpu.memory_space<vmem>>, %arg5: memref<32x256xf32, #tpu.memory_space<vmem>>, %arg6: memref<1x256xf32, #tpu.memory_space<vmem>>, %arg7: memref<64x64xf32, #tpu.memory_space<vmem>>, %arg8: memref<1x64xf32, #tpu.memory_space<vmem>>, %arg9: memref<64x1xf32, #tpu.memory_space<vmem>>, %arg10: memref<1x1xf32, #tpu.memory_space<vmem>>, %arg11: memref<8x1xf32, #tpu.memory_space<vmem>>) attributes {dimension_semantics = [], scalar_prefetch = 0 : i64, scratch_operands = 0 : i64, tpu.core_type = #tpu.core_type<tc>} {
    %0 = tpu.iota {dimensions = array<i32: 1>} : vector<1x256xi32>
    %c128_i32 = arith.constant 128 : i32
    %1 = vector.broadcast %c128_i32 : i32 to vector<1x256xi32>
    %2 = arith.cmpi sge, %0, %1 : vector<1x256xi32>
    %c192_i32 = arith.constant 192 : i32
    %3 = vector.broadcast %c192_i32 : i32 to vector<1x256xi32>
    %4 = arith.cmpi slt, %0, %3 : vector<1x256xi32>
    %5 = arith.andi %2, %4 : vector<1x256xi1>
    %cst = arith.constant 1.000000e+00 : f32
    %cst_0 = arith.constant 5.000000e-01 : f32
    %6 = vector.broadcast %cst : f32 to vector<1x256xf32>
    %7 = vector.broadcast %cst_0 : f32 to vector<1x256xf32>
    %8 = arith.select %5, %6, %7 : vector<1x256xi1>, vector<1x256xf32>
    %cst_1 = arith.constant 0.000000e+00 : f32
    %cst_2 = arith.constant 5.000000e-01 : f32
    %9 = vector.broadcast %cst_1 : f32 to vector<1x256xf32>
    %10 = vector.broadcast %cst_2 : f32 to vector<1x256xf32>
    %11 = arith.select %5, %9, %10 : vector<1x256xi1>, vector<1x256xf32>
    %12 = tpu.iota {dimensions = array<i32: 1>} : vector<1x128xi32>
    %c64_i32 = arith.constant 64 : i32
    %13 = vector.broadcast %c64_i32 : i32 to vector<1x128xi32>
    %14 = arith.cmpi sge, %12, %13 : vector<1x128xi32>
    %c96_i32 = arith.constant 96 : i32
    %15 = vector.broadcast %c96_i32 : i32 to vector<1x128xi32>
    %16 = arith.cmpi slt, %12, %15 : vector<1x128xi32>
    %17 = arith.andi %14, %16 : vector<1x128xi1>
    %cst_3 = arith.constant 1.000000e+00 : f32
    %cst_4 = arith.constant 5.000000e-01 : f32
    %18 = vector.broadcast %cst_3 : f32 to vector<1x128xf32>
    %19 = vector.broadcast %cst_4 : f32 to vector<1x128xf32>
    %20 = arith.select %17, %18, %19 : vector<1x128xi1>, vector<1x128xf32>
    %cst_5 = arith.constant 0.000000e+00 : f32
    %cst_6 = arith.constant 5.000000e-01 : f32
    %21 = vector.broadcast %cst_5 : f32 to vector<1x128xf32>
    %22 = vector.broadcast %cst_6 : f32 to vector<1x128xf32>
    %23 = arith.select %17, %21, %22 : vector<1x128xi1>, vector<1x128xf32>
    %c0 = arith.constant 0 : index
    %c0_7 = arith.constant 0 : index
    %24 = vector.load %arg2[%c0, %c0_7] : memref<64x256xf32, #tpu.memory_space<vmem>>, vector<64x256xf32>
    %c0_8 = arith.constant 0 : index
    %c0_9 = arith.constant 0 : index
    %25 = vector.load %arg4[%c0_8, %c0_9] : memref<64x256xf32, #tpu.memory_space<vmem>>, vector<32x256xf32>
    %c32 = arith.constant 32 : index
    %c0_10 = arith.constant 0 : index
    %26 = vector.load %arg4[%c32, %c0_10] : memref<64x256xf32, #tpu.memory_space<vmem>>, vector<32x256xf32>
    %c0_11 = arith.constant 0 : index
    %c0_12 = arith.constant 0 : index
    %27 = vector.load %arg5[%c0_11, %c0_12] : memref<32x256xf32, #tpu.memory_space<vmem>>, vector<32x128xf32>
    %c0_13 = arith.constant 0 : index
    %c128 = arith.constant 128 : index
    %28 = vector.load %arg5[%c0_13, %c128] : memref<32x256xf32, #tpu.memory_space<vmem>>, vector<32x128xf32>
    %c0_14 = arith.constant 0 : index
    %c0_15 = arith.constant 0 : index
    %29 = vector.load %arg6[%c0_14, %c0_15] : memref<1x256xf32, #tpu.memory_space<vmem>>, vector<1x128xf32>
    %c0_16 = arith.constant 0 : index
    %c128_17 = arith.constant 128 : index
    %30 = vector.load %arg6[%c0_16, %c128_17] : memref<1x256xf32, #tpu.memory_space<vmem>>, vector<1x128xf32>
    %c0_18 = arith.constant 0 : index
    %c0_19 = arith.constant 0 : index
    %31 = vector.load %arg0[%c0_18, %c0_19] : memref<64x16xf32, #tpu.memory_space<vmem>>, vector<64x16xf32>
    %c0_20 = arith.constant 0 : index
    %c0_21 = arith.constant 0 : index
    %32 = vector.load %arg1[%c0_20, %c0_21] : memref<16x256xf32, #tpu.memory_space<vmem>>, vector<16x256xf32>
    %cst_22 = arith.constant dense<0.000000e+00> : vector<64x256xf32>
    %33 = tpu.matmul %31, %32, %cst_22 {dimension_numbers = #tpu.dot_dimension_numbers<[1], [0], [0], [1], [0, 0, 1, 1], [], []>} : vector<64x16xf32>, vector<16x256xf32>, vector<64x256xf32> -> vector<64x256xf32>
    %c0_23 = arith.constant 0 : index
    %c0_24 = arith.constant 0 : index
    %34 = vector.load %arg3[%c0_23, %c0_24] : memref<1x256xf32, #tpu.memory_space<vmem>>, vector<1x256xf32>
    %35 = vector.broadcast %34 : vector<1x256xf32> to vector<64x256xf32>
    %36 = arith.addf %33, %35 : vector<64x256xf32>
    %cst_25 = arith.constant 0.000000e+00 : f32
    %37 = vector.broadcast %cst_25 : f32 to vector<8x64xf32>
    %38 = vector.extract_strided_slice %36 {offsets = [0, 0], sizes = [8, 256], strides = [1, 1]} : vector<64x256xf32> to vector<8x256xf32>
    %cst_26 = arith.constant dense<0.000000e+00> : vector<8x256xf32>
    %39 = tpu.matmul %37, %24, %cst_26 {dimension_numbers = #tpu.dot_dimension_numbers<[1], [0], [0], [1], [0, 0, 1, 1], [], []>} : vector<8x64xf32>, vector<64x256xf32>, vector<8x256xf32> -> vector<8x256xf32>
    %40 = arith.addf %38, %39 : vector<8x256xf32>
    %41 = vector.broadcast %8 : vector<1x256xf32> to vector<8x256xf32>
    %42 = arith.mulf %40, %41 : vector<8x256xf32>
    %43 = math.tanh %42 : vector<8x256xf32>
    %44 = vector.broadcast %8 : vector<1x256xf32> to vector<8x256xf32>
    %45 = arith.mulf %43, %44 : vector<8x256xf32>
    %46 = vector.broadcast %11 : vector<1x256xf32> to vector<8x256xf32>
    %47 = arith.addf %45, %46 : vector<8x256xf32>
    %48 = vector.extract_strided_slice %47 {offsets = [0, 0], sizes = [8, 64], strides = [1, 1]} : vector<8x256xf32> to vector<8x64xf32>
    %49 = vector.extract_strided_slice %47 {offsets = [0, 64], sizes = [8, 64], strides = [1, 1]} : vector<8x256xf32> to vector<8x64xf32>
    %50 = vector.extract_strided_slice %47 {offsets = [0, 128], sizes = [8, 64], strides = [1, 1]} : vector<8x256xf32> to vector<8x64xf32>
    %51 = vector.extract_strided_slice %47 {offsets = [0, 192], sizes = [8, 64], strides = [1, 1]} : vector<8x256xf32> to vector<8x64xf32>
    %52 = arith.mulf %49, %37 : vector<8x64xf32>
    %53 = arith.mulf %48, %50 : vector<8x64xf32>
    %54 = arith.addf %52, %53 : vector<8x64xf32>
    %55 = math.tanh %54 : vector<8x64xf32>
    %56 = arith.mulf %51, %55 : vector<8x64xf32>
    %57 = vector.extract_strided_slice %56 {offsets = [0, 0], sizes = [8, 32], strides = [1, 1]} : vector<8x64xf32> to vector<8x32xf32>
    %cst_27 = arith.constant dense<0.000000e+00> : vector<8x256xf32>
    %58 = tpu.matmul %57, %25, %cst_27 {dimension_numbers = #tpu.dot_dimension_numbers<[1], [0], [0], [1], [0, 0, 1, 1], [], []>} : vector<8x32xf32>, vector<32x256xf32>, vector<8x256xf32> -> vector<8x256xf32>
    %59 = vector.extract_strided_slice %56 {offsets = [0, 32], sizes = [8, 32], strides = [1, 1]} : vector<8x64xf32> to vector<8x32xf32>
    %cst_28 = arith.constant dense<0.000000e+00> : vector<8x256xf32>
    %60 = tpu.matmul %59, %26, %cst_28 {dimension_numbers = #tpu.dot_dimension_numbers<[1], [0], [0], [1], [0, 0, 1, 1], [], []>} : vector<8x32xf32>, vector<32x256xf32>, vector<8x256xf32> -> vector<8x256xf32>
    %61 = vector.extract_strided_slice %36 {offsets = [8, 0], sizes = [8, 256], strides = [1, 1]} : vector<64x256xf32> to vector<8x256xf32>
    %cst_29 = arith.constant dense<0.000000e+00> : vector<8x256xf32>
    %62 = tpu.matmul %56, %24, %cst_29 {dimension_numbers = #tpu.dot_dimension_numbers<[1], [0], [0], [1], [0, 0, 1, 1], [], []>} : vector<8x64xf32>, vector<64x256xf32>, vector<8x256xf32> -> vector<8x256xf32>
    %63 = arith.addf %61, %62 : vector<8x256xf32>
    %64 = vector.broadcast %8 : vector<1x256xf32> to vector<8x256xf32>
    %65 = arith.mulf %63, %64 : vector<8x256xf32>
    %66 = math.tanh %65 : vector<8x256xf32>
    %67 = vector.broadcast %8 : vector<1x256xf32> to vector<8x256xf32>
    %68 = arith.mulf %66, %67 : vector<8x256xf32>
    %69 = vector.broadcast %11 : vector<1x256xf32> to vector<8x256xf32>
    %70 = arith.addf %68, %69 : vector<8x256xf32>
    %71 = vector.extract_strided_slice %70 {offsets = [0, 0], sizes = [8, 64], strides = [1, 1]} : vector<8x256xf32> to vector<8x64xf32>
    %72 = vector.extract_strided_slice %70 {offsets = [0, 64], sizes = [8, 64], strides = [1, 1]} : vector<8x256xf32> to vector<8x64xf32>
    %73 = vector.extract_strided_slice %70 {offsets = [0, 128], sizes = [8, 64], strides = [1, 1]} : vector<8x256xf32> to vector<8x64xf32>
    %74 = vector.extract_strided_slice %70 {offsets = [0, 192], sizes = [8, 64], strides = [1, 1]} : vector<8x256xf32> to vector<8x64xf32>
    %75 = arith.mulf %72, %54 : vector<8x64xf32>
    %76 = arith.mulf %71, %73 : vector<8x64xf32>
    %77 = arith.addf %75, %76 : vector<8x64xf32>
    %78 = math.tanh %77 : vector<8x64xf32>
    %79 = arith.mulf %74, %78 : vector<8x64xf32>
    %80 = vector.extract_strided_slice %79 {offsets = [0, 0], sizes = [8, 32], strides = [1, 1]} : vector<8x64xf32> to vector<8x32xf32>
    %cst_30 = arith.constant dense<0.000000e+00> : vector<8x256xf32>
    %81 = tpu.matmul %80, %25, %cst_30 {dimension_numbers = #tpu.dot_dimension_numbers<[1], [0], [0], [1], [0, 0, 1, 1], [], []>} : vector<8x32xf32>, vector<32x256xf32>, vector<8x256xf32> -> vector<8x256xf32>
    %82 = vector.extract_strided_slice %79 {offsets = [0, 32], sizes = [8, 32], strides = [1, 1]} : vector<8x64xf32> to vector<8x32xf32>
    %cst_31 = arith.constant dense<0.000000e+00> : vector<8x256xf32>
    %83 = tpu.matmul %82, %26, %cst_31 {dimension_numbers = #tpu.dot_dimension_numbers<[1], [0], [0], [1], [0, 0, 1, 1], [], []>} : vector<8x32xf32>, vector<32x256xf32>, vector<8x256xf32> -> vector<8x256xf32>
    %84 = vector.extract_strided_slice %36 {offsets = [16, 0], sizes = [8, 256], strides = [1, 1]} : vector<64x256xf32> to vector<8x256xf32>
    %cst_32 = arith.constant dense<0.000000e+00> : vector<8x256xf32>
    %85 = tpu.matmul %79, %24, %cst_32 {dimension_numbers = #tpu.dot_dimension_numbers<[1], [0], [0], [1], [0, 0, 1, 1], [], []>} : vector<8x64xf32>, vector<64x256xf32>, vector<8x256xf32> -> vector<8x256xf32>
    %86 = arith.addf %84, %85 : vector<8x256xf32>
    %87 = vector.broadcast %8 : vector<1x256xf32> to vector<8x256xf32>
    %88 = arith.mulf %86, %87 : vector<8x256xf32>
    %89 = math.tanh %88 : vector<8x256xf32>
    %90 = vector.broadcast %8 : vector<1x256xf32> to vector<8x256xf32>
    %91 = arith.mulf %89, %90 : vector<8x256xf32>
    %92 = vector.broadcast %11 : vector<1x256xf32> to vector<8x256xf32>
    %93 = arith.addf %91, %92 : vector<8x256xf32>
    %94 = vector.extract_strided_slice %93 {offsets = [0, 0], sizes = [8, 64], strides = [1, 1]} : vector<8x256xf32> to vector<8x64xf32>
    %95 = vector.extract_strided_slice %93 {offsets = [0, 64], sizes = [8, 64], strides = [1, 1]} : vector<8x256xf32> to vector<8x64xf32>
    %96 = vector.extract_strided_slice %93 {offsets = [0, 128], sizes = [8, 64], strides = [1, 1]} : vector<8x256xf32> to vector<8x64xf32>
    %97 = vector.extract_strided_slice %93 {offsets = [0, 192], sizes = [8, 64], strides = [1, 1]} : vector<8x256xf32> to vector<8x64xf32>
    %98 = arith.mulf %95, %77 : vector<8x64xf32>
    %99 = arith.mulf %94, %96 : vector<8x64xf32>
    %100 = arith.addf %98, %99 : vector<8x64xf32>
    %101 = math.tanh %100 : vector<8x64xf32>
    %102 = arith.mulf %97, %101 : vector<8x64xf32>
    %103 = vector.extract_strided_slice %102 {offsets = [0, 0], sizes = [8, 32], strides = [1, 1]} : vector<8x64xf32> to vector<8x32xf32>
    %cst_33 = arith.constant dense<0.000000e+00> : vector<8x256xf32>
    %104 = tpu.matmul %103, %25, %cst_33 {dimension_numbers = #tpu.dot_dimension_numbers<[1], [0], [0], [1], [0, 0, 1, 1], [], []>} : vector<8x32xf32>, vector<32x256xf32>, vector<8x256xf32> -> vector<8x256xf32>
    %105 = vector.extract_strided_slice %102 {offsets = [0, 32], sizes = [8, 32], strides = [1, 1]} : vector<8x64xf32> to vector<8x32xf32>
    %cst_34 = arith.constant dense<0.000000e+00> : vector<8x256xf32>
    %106 = tpu.matmul %105, %26, %cst_34 {dimension_numbers = #tpu.dot_dimension_numbers<[1], [0], [0], [1], [0, 0, 1, 1], [], []>} : vector<8x32xf32>, vector<32x256xf32>, vector<8x256xf32> -> vector<8x256xf32>
    %107 = vector.extract_strided_slice %36 {offsets = [24, 0], sizes = [8, 256], strides = [1, 1]} : vector<64x256xf32> to vector<8x256xf32>
    %cst_35 = arith.constant dense<0.000000e+00> : vector<8x256xf32>
    %108 = tpu.matmul %102, %24, %cst_35 {dimension_numbers = #tpu.dot_dimension_numbers<[1], [0], [0], [1], [0, 0, 1, 1], [], []>} : vector<8x64xf32>, vector<64x256xf32>, vector<8x256xf32> -> vector<8x256xf32>
    %109 = arith.addf %107, %108 : vector<8x256xf32>
    %110 = vector.broadcast %8 : vector<1x256xf32> to vector<8x256xf32>
    %111 = arith.mulf %109, %110 : vector<8x256xf32>
    %112 = math.tanh %111 : vector<8x256xf32>
    %113 = vector.broadcast %8 : vector<1x256xf32> to vector<8x256xf32>
    %114 = arith.mulf %112, %113 : vector<8x256xf32>
    %115 = vector.broadcast %11 : vector<1x256xf32> to vector<8x256xf32>
    %116 = arith.addf %114, %115 : vector<8x256xf32>
    %117 = vector.extract_strided_slice %116 {offsets = [0, 0], sizes = [8, 64], strides = [1, 1]} : vector<8x256xf32> to vector<8x64xf32>
    %118 = vector.extract_strided_slice %116 {offsets = [0, 64], sizes = [8, 64], strides = [1, 1]} : vector<8x256xf32> to vector<8x64xf32>
    %119 = vector.extract_strided_slice %116 {offsets = [0, 128], sizes = [8, 64], strides = [1, 1]} : vector<8x256xf32> to vector<8x64xf32>
    %120 = vector.extract_strided_slice %116 {offsets = [0, 192], sizes = [8, 64], strides = [1, 1]} : vector<8x256xf32> to vector<8x64xf32>
    %121 = arith.mulf %118, %100 : vector<8x64xf32>
    %122 = arith.mulf %117, %119 : vector<8x64xf32>
    %123 = arith.addf %121, %122 : vector<8x64xf32>
    %124 = math.tanh %123 : vector<8x64xf32>
    %125 = arith.mulf %120, %124 : vector<8x64xf32>
    %126 = vector.extract_strided_slice %125 {offsets = [0, 0], sizes = [8, 32], strides = [1, 1]} : vector<8x64xf32> to vector<8x32xf32>
    %cst_36 = arith.constant dense<0.000000e+00> : vector<8x256xf32>
    %127 = tpu.matmul %126, %25, %cst_36 {dimension_numbers = #tpu.dot_dimension_numbers<[1], [0], [0], [1], [0, 0, 1, 1], [], []>} : vector<8x32xf32>, vector<32x256xf32>, vector<8x256xf32> -> vector<8x256xf32>
    %128 = vector.extract_strided_slice %125 {offsets = [0, 32], sizes = [8, 32], strides = [1, 1]} : vector<8x64xf32> to vector<8x32xf32>
    %cst_37 = arith.constant dense<0.000000e+00> : vector<8x256xf32>
    %129 = tpu.matmul %128, %26, %cst_37 {dimension_numbers = #tpu.dot_dimension_numbers<[1], [0], [0], [1], [0, 0, 1, 1], [], []>} : vector<8x32xf32>, vector<32x256xf32>, vector<8x256xf32> -> vector<8x256xf32>
    %130 = vector.extract_strided_slice %36 {offsets = [32, 0], sizes = [8, 256], strides = [1, 1]} : vector<64x256xf32> to vector<8x256xf32>
    %cst_38 = arith.constant dense<0.000000e+00> : vector<8x256xf32>
    %131 = tpu.matmul %125, %24, %cst_38 {dimension_numbers = #tpu.dot_dimension_numbers<[1], [0], [0], [1], [0, 0, 1, 1], [], []>} : vector<8x64xf32>, vector<64x256xf32>, vector<8x256xf32> -> vector<8x256xf32>
    %132 = arith.addf %130, %131 : vector<8x256xf32>
    %133 = vector.broadcast %8 : vector<1x256xf32> to vector<8x256xf32>
    %134 = arith.mulf %132, %133 : vector<8x256xf32>
    %135 = math.tanh %134 : vector<8x256xf32>
    %136 = vector.broadcast %8 : vector<1x256xf32> to vector<8x256xf32>
    %137 = arith.mulf %135, %136 : vector<8x256xf32>
    %138 = vector.broadcast %11 : vector<1x256xf32> to vector<8x256xf32>
    %139 = arith.addf %137, %138 : vector<8x256xf32>
    %140 = vector.extract_strided_slice %139 {offsets = [0, 0], sizes = [8, 64], strides = [1, 1]} : vector<8x256xf32> to vector<8x64xf32>
    %141 = vector.extract_strided_slice %139 {offsets = [0, 64], sizes = [8, 64], strides = [1, 1]} : vector<8x256xf32> to vector<8x64xf32>
    %142 = vector.extract_strided_slice %139 {offsets = [0, 128], sizes = [8, 64], strides = [1, 1]} : vector<8x256xf32> to vector<8x64xf32>
    %143 = vector.extract_strided_slice %139 {offsets = [0, 192], sizes = [8, 64], strides = [1, 1]} : vector<8x256xf32> to vector<8x64xf32>
    %144 = arith.mulf %141, %123 : vector<8x64xf32>
    %145 = arith.mulf %140, %142 : vector<8x64xf32>
    %146 = arith.addf %144, %145 : vector<8x64xf32>
    %147 = math.tanh %146 : vector<8x64xf32>
    %148 = arith.mulf %143, %147 : vector<8x64xf32>
    %149 = vector.extract_strided_slice %148 {offsets = [0, 0], sizes = [8, 32], strides = [1, 1]} : vector<8x64xf32> to vector<8x32xf32>
    %cst_39 = arith.constant dense<0.000000e+00> : vector<8x256xf32>
    %150 = tpu.matmul %149, %25, %cst_39 {dimension_numbers = #tpu.dot_dimension_numbers<[1], [0], [0], [1], [0, 0, 1, 1], [], []>} : vector<8x32xf32>, vector<32x256xf32>, vector<8x256xf32> -> vector<8x256xf32>
    %151 = arith.addf %129, %150 : vector<8x256xf32>
    %152 = vector.extract_strided_slice %148 {offsets = [0, 32], sizes = [8, 32], strides = [1, 1]} : vector<8x64xf32> to vector<8x32xf32>
    %cst_40 = arith.constant dense<0.000000e+00> : vector<8x256xf32>
    %153 = tpu.matmul %152, %26, %cst_40 {dimension_numbers = #tpu.dot_dimension_numbers<[1], [0], [0], [1], [0, 0, 1, 1], [], []>} : vector<8x32xf32>, vector<32x256xf32>, vector<8x256xf32> -> vector<8x256xf32>
    %154 = arith.addf %127, %153 : vector<8x256xf32>
    %155 = vector.extract_strided_slice %36 {offsets = [40, 0], sizes = [8, 256], strides = [1, 1]} : vector<64x256xf32> to vector<8x256xf32>
    %cst_41 = arith.constant dense<0.000000e+00> : vector<8x256xf32>
    %156 = tpu.matmul %148, %24, %cst_41 {dimension_numbers = #tpu.dot_dimension_numbers<[1], [0], [0], [1], [0, 0, 1, 1], [], []>} : vector<8x64xf32>, vector<64x256xf32>, vector<8x256xf32> -> vector<8x256xf32>
    %157 = arith.addf %155, %156 : vector<8x256xf32>
    %158 = vector.broadcast %8 : vector<1x256xf32> to vector<8x256xf32>
    %159 = arith.mulf %157, %158 : vector<8x256xf32>
    %160 = math.tanh %159 : vector<8x256xf32>
    %161 = vector.broadcast %8 : vector<1x256xf32> to vector<8x256xf32>
    %162 = arith.mulf %160, %161 : vector<8x256xf32>
    %163 = vector.broadcast %11 : vector<1x256xf32> to vector<8x256xf32>
    %164 = arith.addf %162, %163 : vector<8x256xf32>
    %165 = vector.extract_strided_slice %164 {offsets = [0, 0], sizes = [8, 64], strides = [1, 1]} : vector<8x256xf32> to vector<8x64xf32>
    %166 = vector.extract_strided_slice %164 {offsets = [0, 64], sizes = [8, 64], strides = [1, 1]} : vector<8x256xf32> to vector<8x64xf32>
    %167 = vector.extract_strided_slice %164 {offsets = [0, 128], sizes = [8, 64], strides = [1, 1]} : vector<8x256xf32> to vector<8x64xf32>
    %168 = vector.extract_strided_slice %164 {offsets = [0, 192], sizes = [8, 64], strides = [1, 1]} : vector<8x256xf32> to vector<8x64xf32>
    %169 = arith.mulf %166, %146 : vector<8x64xf32>
    %170 = arith.mulf %165, %167 : vector<8x64xf32>
    %171 = arith.addf %169, %170 : vector<8x64xf32>
    %172 = math.tanh %171 : vector<8x64xf32>
    %173 = arith.mulf %168, %172 : vector<8x64xf32>
    %174 = vector.extract_strided_slice %173 {offsets = [0, 0], sizes = [8, 32], strides = [1, 1]} : vector<8x64xf32> to vector<8x32xf32>
    %cst_42 = arith.constant dense<0.000000e+00> : vector<8x256xf32>
    %175 = tpu.matmul %174, %25, %cst_42 {dimension_numbers = #tpu.dot_dimension_numbers<[1], [0], [0], [1], [0, 0, 1, 1], [], []>} : vector<8x32xf32>, vector<32x256xf32>, vector<8x256xf32> -> vector<8x256xf32>
    %176 = arith.addf %106, %175 : vector<8x256xf32>
    %177 = vector.extract_strided_slice %173 {offsets = [0, 32], sizes = [8, 32], strides = [1, 1]} : vector<8x64xf32> to vector<8x32xf32>
    %cst_43 = arith.constant dense<0.000000e+00> : vector<8x256xf32>
    %178 = tpu.matmul %177, %26, %cst_43 {dimension_numbers = #tpu.dot_dimension_numbers<[1], [0], [0], [1], [0, 0, 1, 1], [], []>} : vector<8x32xf32>, vector<32x256xf32>, vector<8x256xf32> -> vector<8x256xf32>
    %179 = arith.addf %104, %178 : vector<8x256xf32>
    %180 = vector.extract_strided_slice %36 {offsets = [48, 0], sizes = [8, 256], strides = [1, 1]} : vector<64x256xf32> to vector<8x256xf32>
    %cst_44 = arith.constant dense<0.000000e+00> : vector<8x256xf32>
    %181 = tpu.matmul %173, %24, %cst_44 {dimension_numbers = #tpu.dot_dimension_numbers<[1], [0], [0], [1], [0, 0, 1, 1], [], []>} : vector<8x64xf32>, vector<64x256xf32>, vector<8x256xf32> -> vector<8x256xf32>
    %182 = arith.addf %180, %181 : vector<8x256xf32>
    %183 = vector.broadcast %8 : vector<1x256xf32> to vector<8x256xf32>
    %184 = arith.mulf %182, %183 : vector<8x256xf32>
    %185 = math.tanh %184 : vector<8x256xf32>
    %186 = vector.broadcast %8 : vector<1x256xf32> to vector<8x256xf32>
    %187 = arith.mulf %185, %186 : vector<8x256xf32>
    %188 = vector.broadcast %11 : vector<1x256xf32> to vector<8x256xf32>
    %189 = arith.addf %187, %188 : vector<8x256xf32>
    %190 = vector.extract_strided_slice %189 {offsets = [0, 0], sizes = [8, 64], strides = [1, 1]} : vector<8x256xf32> to vector<8x64xf32>
    %191 = vector.extract_strided_slice %189 {offsets = [0, 64], sizes = [8, 64], strides = [1, 1]} : vector<8x256xf32> to vector<8x64xf32>
    %192 = vector.extract_strided_slice %189 {offsets = [0, 128], sizes = [8, 64], strides = [1, 1]} : vector<8x256xf32> to vector<8x64xf32>
    %193 = vector.extract_strided_slice %189 {offsets = [0, 192], sizes = [8, 64], strides = [1, 1]} : vector<8x256xf32> to vector<8x64xf32>
    %194 = arith.mulf %191, %171 : vector<8x64xf32>
    %195 = arith.mulf %190, %192 : vector<8x64xf32>
    %196 = arith.addf %194, %195 : vector<8x64xf32>
    %197 = math.tanh %196 : vector<8x64xf32>
    %198 = arith.mulf %193, %197 : vector<8x64xf32>
    %199 = vector.extract_strided_slice %198 {offsets = [0, 0], sizes = [8, 32], strides = [1, 1]} : vector<8x64xf32> to vector<8x32xf32>
    %cst_45 = arith.constant dense<0.000000e+00> : vector<8x256xf32>
    %200 = tpu.matmul %199, %25, %cst_45 {dimension_numbers = #tpu.dot_dimension_numbers<[1], [0], [0], [1], [0, 0, 1, 1], [], []>} : vector<8x32xf32>, vector<32x256xf32>, vector<8x256xf32> -> vector<8x256xf32>
    %201 = arith.addf %83, %200 : vector<8x256xf32>
    %202 = vector.extract_strided_slice %198 {offsets = [0, 32], sizes = [8, 32], strides = [1, 1]} : vector<8x64xf32> to vector<8x32xf32>
    %cst_46 = arith.constant dense<0.000000e+00> : vector<8x256xf32>
    %203 = tpu.matmul %202, %26, %cst_46 {dimension_numbers = #tpu.dot_dimension_numbers<[1], [0], [0], [1], [0, 0, 1, 1], [], []>} : vector<8x32xf32>, vector<32x256xf32>, vector<8x256xf32> -> vector<8x256xf32>
    %204 = arith.addf %81, %203 : vector<8x256xf32>
    %205 = vector.extract_strided_slice %36 {offsets = [56, 0], sizes = [8, 256], strides = [1, 1]} : vector<64x256xf32> to vector<8x256xf32>
    %cst_47 = arith.constant dense<0.000000e+00> : vector<8x256xf32>
    %206 = tpu.matmul %198, %24, %cst_47 {dimension_numbers = #tpu.dot_dimension_numbers<[1], [0], [0], [1], [0, 0, 1, 1], [], []>} : vector<8x64xf32>, vector<64x256xf32>, vector<8x256xf32> -> vector<8x256xf32>
    %207 = arith.addf %205, %206 : vector<8x256xf32>
    %208 = vector.broadcast %8 : vector<1x256xf32> to vector<8x256xf32>
    %209 = arith.mulf %207, %208 : vector<8x256xf32>
    %210 = math.tanh %209 : vector<8x256xf32>
    %211 = vector.broadcast %8 : vector<1x256xf32> to vector<8x256xf32>
    %212 = arith.mulf %210, %211 : vector<8x256xf32>
    %213 = vector.broadcast %11 : vector<1x256xf32> to vector<8x256xf32>
    %214 = arith.addf %212, %213 : vector<8x256xf32>
    %215 = vector.extract_strided_slice %214 {offsets = [0, 0], sizes = [8, 64], strides = [1, 1]} : vector<8x256xf32> to vector<8x64xf32>
    %216 = vector.extract_strided_slice %214 {offsets = [0, 64], sizes = [8, 64], strides = [1, 1]} : vector<8x256xf32> to vector<8x64xf32>
    %217 = vector.extract_strided_slice %214 {offsets = [0, 128], sizes = [8, 64], strides = [1, 1]} : vector<8x256xf32> to vector<8x64xf32>
    %218 = vector.extract_strided_slice %214 {offsets = [0, 192], sizes = [8, 64], strides = [1, 1]} : vector<8x256xf32> to vector<8x64xf32>
    %219 = arith.mulf %216, %196 : vector<8x64xf32>
    %220 = arith.mulf %215, %217 : vector<8x64xf32>
    %221 = arith.addf %219, %220 : vector<8x64xf32>
    %222 = math.tanh %221 : vector<8x64xf32>
    %223 = arith.mulf %218, %222 : vector<8x64xf32>
    %224 = vector.extract_strided_slice %223 {offsets = [0, 0], sizes = [8, 32], strides = [1, 1]} : vector<8x64xf32> to vector<8x32xf32>
    %cst_48 = arith.constant dense<0.000000e+00> : vector<8x256xf32>
    %225 = tpu.matmul %224, %25, %cst_48 {dimension_numbers = #tpu.dot_dimension_numbers<[1], [0], [0], [1], [0, 0, 1, 1], [], []>} : vector<8x32xf32>, vector<32x256xf32>, vector<8x256xf32> -> vector<8x256xf32>
    %226 = arith.addf %60, %225 : vector<8x256xf32>
    %227 = vector.extract_strided_slice %223 {offsets = [0, 32], sizes = [8, 32], strides = [1, 1]} : vector<8x64xf32> to vector<8x32xf32>
    %cst_49 = arith.constant dense<0.000000e+00> : vector<8x256xf32>
    %228 = tpu.matmul %227, %26, %cst_49 {dimension_numbers = #tpu.dot_dimension_numbers<[1], [0], [0], [1], [0, 0, 1, 1], [], []>} : vector<8x32xf32>, vector<32x256xf32>, vector<8x256xf32> -> vector<8x256xf32>
    %229 = arith.addf %58, %228 : vector<8x256xf32>
    %cst_50 = arith.constant 0.000000e+00 : f32
    %230 = vector.broadcast %cst_50 : f32 to vector<8x32xf32>
    %231 = vector.extract_strided_slice %229 {offsets = [0, 0], sizes = [8, 128], strides = [1, 1]} : vector<8x256xf32> to vector<8x128xf32>
    %232 = vector.broadcast %29 : vector<1x128xf32> to vector<8x128xf32>
    %233 = arith.addf %231, %232 : vector<8x128xf32>
    %cst_51 = arith.constant dense<0.000000e+00> : vector<8x128xf32>
    %234 = tpu.matmul %230, %27, %cst_51 {dimension_numbers = #tpu.dot_dimension_numbers<[1], [0], [0], [1], [0, 0, 1, 1], [], []>} : vector<8x32xf32>, vector<32x128xf32>, vector<8x128xf32> -> vector<8x128xf32>
    %235 = arith.addf %233, %234 : vector<8x128xf32>
    %236 = vector.broadcast %20 : vector<1x128xf32> to vector<8x128xf32>
    %237 = arith.mulf %235, %236 : vector<8x128xf32>
    %238 = math.tanh %237 : vector<8x128xf32>
    %239 = vector.broadcast %20 : vector<1x128xf32> to vector<8x128xf32>
    %240 = arith.mulf %238, %239 : vector<8x128xf32>
    %241 = vector.broadcast %23 : vector<1x128xf32> to vector<8x128xf32>
    %242 = arith.addf %240, %241 : vector<8x128xf32>
    %243 = vector.extract_strided_slice %242 {offsets = [0, 0], sizes = [8, 32], strides = [1, 1]} : vector<8x128xf32> to vector<8x32xf32>
    %244 = vector.extract_strided_slice %242 {offsets = [0, 32], sizes = [8, 32], strides = [1, 1]} : vector<8x128xf32> to vector<8x32xf32>
    %245 = vector.extract_strided_slice %242 {offsets = [0, 64], sizes = [8, 32], strides = [1, 1]} : vector<8x128xf32> to vector<8x32xf32>
    %246 = vector.extract_strided_slice %242 {offsets = [0, 96], sizes = [8, 32], strides = [1, 1]} : vector<8x128xf32> to vector<8x32xf32>
    %247 = arith.mulf %244, %230 : vector<8x32xf32>
    %248 = arith.mulf %243, %245 : vector<8x32xf32>
    %249 = arith.addf %247, %248 : vector<8x32xf32>
    %250 = math.tanh %249 : vector<8x32xf32>
    %251 = arith.mulf %246, %250 : vector<8x32xf32>
    %252 = vector.extract_strided_slice %204 {offsets = [0, 0], sizes = [8, 128], strides = [1, 1]} : vector<8x256xf32> to vector<8x128xf32>
    %253 = vector.broadcast %29 : vector<1x128xf32> to vector<8x128xf32>
    %254 = arith.addf %252, %253 : vector<8x128xf32>
    %cst_52 = arith.constant dense<0.000000e+00> : vector<8x128xf32>
    %255 = tpu.matmul %251, %27, %cst_52 {dimension_numbers = #tpu.dot_dimension_numbers<[1], [0], [0], [1], [0, 0, 1, 1], [], []>} : vector<8x32xf32>, vector<32x128xf32>, vector<8x128xf32> -> vector<8x128xf32>
    %256 = arith.addf %254, %255 : vector<8x128xf32>
    %257 = vector.broadcast %20 : vector<1x128xf32> to vector<8x128xf32>
    %258 = arith.mulf %256, %257 : vector<8x128xf32>
    %259 = math.tanh %258 : vector<8x128xf32>
    %260 = vector.broadcast %20 : vector<1x128xf32> to vector<8x128xf32>
    %261 = arith.mulf %259, %260 : vector<8x128xf32>
    %262 = vector.broadcast %23 : vector<1x128xf32> to vector<8x128xf32>
    %263 = arith.addf %261, %262 : vector<8x128xf32>
    %264 = vector.extract_strided_slice %263 {offsets = [0, 0], sizes = [8, 32], strides = [1, 1]} : vector<8x128xf32> to vector<8x32xf32>
    %265 = vector.extract_strided_slice %263 {offsets = [0, 32], sizes = [8, 32], strides = [1, 1]} : vector<8x128xf32> to vector<8x32xf32>
    %266 = vector.extract_strided_slice %263 {offsets = [0, 64], sizes = [8, 32], strides = [1, 1]} : vector<8x128xf32> to vector<8x32xf32>
    %267 = vector.extract_strided_slice %263 {offsets = [0, 96], sizes = [8, 32], strides = [1, 1]} : vector<8x128xf32> to vector<8x32xf32>
    %268 = arith.mulf %265, %249 : vector<8x32xf32>
    %269 = arith.mulf %264, %266 : vector<8x32xf32>
    %270 = arith.addf %268, %269 : vector<8x32xf32>
    %271 = math.tanh %270 : vector<8x32xf32>
    %272 = arith.mulf %267, %271 : vector<8x32xf32>
    %273 = vector.extract_strided_slice %179 {offsets = [0, 0], sizes = [8, 128], strides = [1, 1]} : vector<8x256xf32> to vector<8x128xf32>
    %274 = vector.broadcast %29 : vector<1x128xf32> to vector<8x128xf32>
    %275 = arith.addf %273, %274 : vector<8x128xf32>
    %cst_53 = arith.constant dense<0.000000e+00> : vector<8x128xf32>
    %276 = tpu.matmul %272, %27, %cst_53 {dimension_numbers = #tpu.dot_dimension_numbers<[1], [0], [0], [1], [0, 0, 1, 1], [], []>} : vector<8x32xf32>, vector<32x128xf32>, vector<8x128xf32> -> vector<8x128xf32>
    %277 = arith.addf %275, %276 : vector<8x128xf32>
    %278 = vector.broadcast %20 : vector<1x128xf32> to vector<8x128xf32>
    %279 = arith.mulf %277, %278 : vector<8x128xf32>
    %280 = math.tanh %279 : vector<8x128xf32>
    %281 = vector.broadcast %20 : vector<1x128xf32> to vector<8x128xf32>
    %282 = arith.mulf %280, %281 : vector<8x128xf32>
    %283 = vector.broadcast %23 : vector<1x128xf32> to vector<8x128xf32>
    %284 = arith.addf %282, %283 : vector<8x128xf32>
    %285 = vector.extract_strided_slice %284 {offsets = [0, 0], sizes = [8, 32], strides = [1, 1]} : vector<8x128xf32> to vector<8x32xf32>
    %286 = vector.extract_strided_slice %284 {offsets = [0, 32], sizes = [8, 32], strides = [1, 1]} : vector<8x128xf32> to vector<8x32xf32>
    %287 = vector.extract_strided_slice %284 {offsets = [0, 64], sizes = [8, 32], strides = [1, 1]} : vector<8x128xf32> to vector<8x32xf32>
    %288 = vector.extract_strided_slice %284 {offsets = [0, 96], sizes = [8, 32], strides = [1, 1]} : vector<8x128xf32> to vector<8x32xf32>
    %289 = arith.mulf %286, %270 : vector<8x32xf32>
    %290 = arith.mulf %285, %287 : vector<8x32xf32>
    %291 = arith.addf %289, %290 : vector<8x32xf32>
    %292 = math.tanh %291 : vector<8x32xf32>
    %293 = arith.mulf %288, %292 : vector<8x32xf32>
    %294 = vector.extract_strided_slice %154 {offsets = [0, 0], sizes = [8, 128], strides = [1, 1]} : vector<8x256xf32> to vector<8x128xf32>
    %295 = vector.broadcast %29 : vector<1x128xf32> to vector<8x128xf32>
    %296 = arith.addf %294, %295 : vector<8x128xf32>
    %cst_54 = arith.constant dense<0.000000e+00> : vector<8x128xf32>
    %297 = tpu.matmul %293, %27, %cst_54 {dimension_numbers = #tpu.dot_dimension_numbers<[1], [0], [0], [1], [0, 0, 1, 1], [], []>} : vector<8x32xf32>, vector<32x128xf32>, vector<8x128xf32> -> vector<8x128xf32>
    %298 = arith.addf %296, %297 : vector<8x128xf32>
    %299 = vector.broadcast %20 : vector<1x128xf32> to vector<8x128xf32>
    %300 = arith.mulf %298, %299 : vector<8x128xf32>
    %301 = math.tanh %300 : vector<8x128xf32>
    %302 = vector.broadcast %20 : vector<1x128xf32> to vector<8x128xf32>
    %303 = arith.mulf %301, %302 : vector<8x128xf32>
    %304 = vector.broadcast %23 : vector<1x128xf32> to vector<8x128xf32>
    %305 = arith.addf %303, %304 : vector<8x128xf32>
    %306 = vector.extract_strided_slice %305 {offsets = [0, 0], sizes = [8, 32], strides = [1, 1]} : vector<8x128xf32> to vector<8x32xf32>
    %307 = vector.extract_strided_slice %305 {offsets = [0, 32], sizes = [8, 32], strides = [1, 1]} : vector<8x128xf32> to vector<8x32xf32>
    %308 = vector.extract_strided_slice %305 {offsets = [0, 64], sizes = [8, 32], strides = [1, 1]} : vector<8x128xf32> to vector<8x32xf32>
    %309 = vector.extract_strided_slice %305 {offsets = [0, 96], sizes = [8, 32], strides = [1, 1]} : vector<8x128xf32> to vector<8x32xf32>
    %310 = arith.mulf %307, %291 : vector<8x32xf32>
    %311 = arith.mulf %306, %308 : vector<8x32xf32>
    %312 = arith.addf %310, %311 : vector<8x32xf32>
    %313 = math.tanh %312 : vector<8x32xf32>
    %314 = arith.mulf %309, %313 : vector<8x32xf32>
    %315 = vector.extract_strided_slice %151 {offsets = [0, 0], sizes = [8, 128], strides = [1, 1]} : vector<8x256xf32> to vector<8x128xf32>
    %316 = vector.broadcast %29 : vector<1x128xf32> to vector<8x128xf32>
    %317 = arith.addf %315, %316 : vector<8x128xf32>
    %cst_55 = arith.constant dense<0.000000e+00> : vector<8x128xf32>
    %318 = tpu.matmul %314, %27, %cst_55 {dimension_numbers = #tpu.dot_dimension_numbers<[1], [0], [0], [1], [0, 0, 1, 1], [], []>} : vector<8x32xf32>, vector<32x128xf32>, vector<8x128xf32> -> vector<8x128xf32>
    %319 = arith.addf %317, %318 : vector<8x128xf32>
    %320 = vector.broadcast %20 : vector<1x128xf32> to vector<8x128xf32>
    %321 = arith.mulf %319, %320 : vector<8x128xf32>
    %322 = math.tanh %321 : vector<8x128xf32>
    %323 = vector.broadcast %20 : vector<1x128xf32> to vector<8x128xf32>
    %324 = arith.mulf %322, %323 : vector<8x128xf32>
    %325 = vector.broadcast %23 : vector<1x128xf32> to vector<8x128xf32>
    %326 = arith.addf %324, %325 : vector<8x128xf32>
    %327 = vector.extract_strided_slice %326 {offsets = [0, 0], sizes = [8, 32], strides = [1, 1]} : vector<8x128xf32> to vector<8x32xf32>
    %328 = vector.extract_strided_slice %326 {offsets = [0, 32], sizes = [8, 32], strides = [1, 1]} : vector<8x128xf32> to vector<8x32xf32>
    %329 = vector.extract_strided_slice %326 {offsets = [0, 64], sizes = [8, 32], strides = [1, 1]} : vector<8x128xf32> to vector<8x32xf32>
    %330 = vector.extract_strided_slice %326 {offsets = [0, 96], sizes = [8, 32], strides = [1, 1]} : vector<8x128xf32> to vector<8x32xf32>
    %331 = arith.mulf %328, %312 : vector<8x32xf32>
    %332 = arith.mulf %327, %329 : vector<8x32xf32>
    %333 = arith.addf %331, %332 : vector<8x32xf32>
    %334 = math.tanh %333 : vector<8x32xf32>
    %335 = arith.mulf %330, %334 : vector<8x32xf32>
    %336 = vector.extract_strided_slice %176 {offsets = [0, 0], sizes = [8, 128], strides = [1, 1]} : vector<8x256xf32> to vector<8x128xf32>
    %337 = vector.broadcast %29 : vector<1x128xf32> to vector<8x128xf32>
    %338 = arith.addf %336, %337 : vector<8x128xf32>
    %cst_56 = arith.constant dense<0.000000e+00> : vector<8x128xf32>
    %339 = tpu.matmul %335, %27, %cst_56 {dimension_numbers = #tpu.dot_dimension_numbers<[1], [0], [0], [1], [0, 0, 1, 1], [], []>} : vector<8x32xf32>, vector<32x128xf32>, vector<8x128xf32> -> vector<8x128xf32>
    %340 = arith.addf %338, %339 : vector<8x128xf32>
    %341 = vector.broadcast %20 : vector<1x128xf32> to vector<8x128xf32>
    %342 = arith.mulf %340, %341 : vector<8x128xf32>
    %343 = math.tanh %342 : vector<8x128xf32>
    %344 = vector.broadcast %20 : vector<1x128xf32> to vector<8x128xf32>
    %345 = arith.mulf %343, %344 : vector<8x128xf32>
    %346 = vector.broadcast %23 : vector<1x128xf32> to vector<8x128xf32>
    %347 = arith.addf %345, %346 : vector<8x128xf32>
    %348 = vector.extract_strided_slice %347 {offsets = [0, 0], sizes = [8, 32], strides = [1, 1]} : vector<8x128xf32> to vector<8x32xf32>
    %349 = vector.extract_strided_slice %347 {offsets = [0, 32], sizes = [8, 32], strides = [1, 1]} : vector<8x128xf32> to vector<8x32xf32>
    %350 = vector.extract_strided_slice %347 {offsets = [0, 64], sizes = [8, 32], strides = [1, 1]} : vector<8x128xf32> to vector<8x32xf32>
    %351 = vector.extract_strided_slice %347 {offsets = [0, 96], sizes = [8, 32], strides = [1, 1]} : vector<8x128xf32> to vector<8x32xf32>
    %352 = arith.mulf %349, %333 : vector<8x32xf32>
    %353 = arith.mulf %348, %350 : vector<8x32xf32>
    %354 = arith.addf %352, %353 : vector<8x32xf32>
    %355 = math.tanh %354 : vector<8x32xf32>
    %356 = arith.mulf %351, %355 : vector<8x32xf32>
    %357 = vector.extract_strided_slice %201 {offsets = [0, 0], sizes = [8, 128], strides = [1, 1]} : vector<8x256xf32> to vector<8x128xf32>
    %358 = vector.broadcast %29 : vector<1x128xf32> to vector<8x128xf32>
    %359 = arith.addf %357, %358 : vector<8x128xf32>
    %cst_57 = arith.constant dense<0.000000e+00> : vector<8x128xf32>
    %360 = tpu.matmul %356, %27, %cst_57 {dimension_numbers = #tpu.dot_dimension_numbers<[1], [0], [0], [1], [0, 0, 1, 1], [], []>} : vector<8x32xf32>, vector<32x128xf32>, vector<8x128xf32> -> vector<8x128xf32>
    %361 = arith.addf %359, %360 : vector<8x128xf32>
    %362 = vector.broadcast %20 : vector<1x128xf32> to vector<8x128xf32>
    %363 = arith.mulf %361, %362 : vector<8x128xf32>
    %364 = math.tanh %363 : vector<8x128xf32>
    %365 = vector.broadcast %20 : vector<1x128xf32> to vector<8x128xf32>
    %366 = arith.mulf %364, %365 : vector<8x128xf32>
    %367 = vector.broadcast %23 : vector<1x128xf32> to vector<8x128xf32>
    %368 = arith.addf %366, %367 : vector<8x128xf32>
    %369 = vector.extract_strided_slice %368 {offsets = [0, 0], sizes = [8, 32], strides = [1, 1]} : vector<8x128xf32> to vector<8x32xf32>
    %370 = vector.extract_strided_slice %368 {offsets = [0, 32], sizes = [8, 32], strides = [1, 1]} : vector<8x128xf32> to vector<8x32xf32>
    %371 = vector.extract_strided_slice %368 {offsets = [0, 64], sizes = [8, 32], strides = [1, 1]} : vector<8x128xf32> to vector<8x32xf32>
    %372 = vector.extract_strided_slice %368 {offsets = [0, 96], sizes = [8, 32], strides = [1, 1]} : vector<8x128xf32> to vector<8x32xf32>
    %373 = arith.mulf %370, %354 : vector<8x32xf32>
    %374 = arith.mulf %369, %371 : vector<8x32xf32>
    %375 = arith.addf %373, %374 : vector<8x32xf32>
    %376 = math.tanh %375 : vector<8x32xf32>
    %377 = arith.mulf %372, %376 : vector<8x32xf32>
    %378 = vector.extract_strided_slice %226 {offsets = [0, 0], sizes = [8, 128], strides = [1, 1]} : vector<8x256xf32> to vector<8x128xf32>
    %379 = vector.broadcast %29 : vector<1x128xf32> to vector<8x128xf32>
    %380 = arith.addf %378, %379 : vector<8x128xf32>
    %cst_58 = arith.constant dense<0.000000e+00> : vector<8x128xf32>
    %381 = tpu.matmul %377, %27, %cst_58 {dimension_numbers = #tpu.dot_dimension_numbers<[1], [0], [0], [1], [0, 0, 1, 1], [], []>} : vector<8x32xf32>, vector<32x128xf32>, vector<8x128xf32> -> vector<8x128xf32>
    %382 = arith.addf %380, %381 : vector<8x128xf32>
    %383 = vector.broadcast %20 : vector<1x128xf32> to vector<8x128xf32>
    %384 = arith.mulf %382, %383 : vector<8x128xf32>
    %385 = math.tanh %384 : vector<8x128xf32>
    %386 = vector.broadcast %20 : vector<1x128xf32> to vector<8x128xf32>
    %387 = arith.mulf %385, %386 : vector<8x128xf32>
    %388 = vector.broadcast %23 : vector<1x128xf32> to vector<8x128xf32>
    %389 = arith.addf %387, %388 : vector<8x128xf32>
    %390 = vector.extract_strided_slice %389 {offsets = [0, 0], sizes = [8, 32], strides = [1, 1]} : vector<8x128xf32> to vector<8x32xf32>
    %391 = vector.extract_strided_slice %389 {offsets = [0, 32], sizes = [8, 32], strides = [1, 1]} : vector<8x128xf32> to vector<8x32xf32>
    %392 = vector.extract_strided_slice %389 {offsets = [0, 64], sizes = [8, 32], strides = [1, 1]} : vector<8x128xf32> to vector<8x32xf32>
    %393 = vector.extract_strided_slice %389 {offsets = [0, 96], sizes = [8, 32], strides = [1, 1]} : vector<8x128xf32> to vector<8x32xf32>
    %394 = arith.mulf %391, %375 : vector<8x32xf32>
    %395 = arith.mulf %390, %392 : vector<8x32xf32>
    %396 = arith.addf %394, %395 : vector<8x32xf32>
    %397 = math.tanh %396 : vector<8x32xf32>
    %398 = arith.mulf %393, %397 : vector<8x32xf32>
    %399 = vector.extract_strided_slice %226 {offsets = [0, 128], sizes = [8, 128], strides = [1, 1]} : vector<8x256xf32> to vector<8x128xf32>
    %400 = vector.broadcast %30 : vector<1x128xf32> to vector<8x128xf32>
    %401 = arith.addf %399, %400 : vector<8x128xf32>
    %cst_59 = arith.constant dense<0.000000e+00> : vector<8x128xf32>
    %402 = tpu.matmul %230, %28, %cst_59 {dimension_numbers = #tpu.dot_dimension_numbers<[1], [0], [0], [1], [0, 0, 1, 1], [], []>} : vector<8x32xf32>, vector<32x128xf32>, vector<8x128xf32> -> vector<8x128xf32>
    %403 = arith.addf %401, %402 : vector<8x128xf32>
    %404 = vector.broadcast %20 : vector<1x128xf32> to vector<8x128xf32>
    %405 = arith.mulf %403, %404 : vector<8x128xf32>
    %406 = math.tanh %405 : vector<8x128xf32>
    %407 = vector.broadcast %20 : vector<1x128xf32> to vector<8x128xf32>
    %408 = arith.mulf %406, %407 : vector<8x128xf32>
    %409 = vector.broadcast %23 : vector<1x128xf32> to vector<8x128xf32>
    %410 = arith.addf %408, %409 : vector<8x128xf32>
    %411 = vector.extract_strided_slice %410 {offsets = [0, 0], sizes = [8, 32], strides = [1, 1]} : vector<8x128xf32> to vector<8x32xf32>
    %412 = vector.extract_strided_slice %410 {offsets = [0, 32], sizes = [8, 32], strides = [1, 1]} : vector<8x128xf32> to vector<8x32xf32>
    %413 = vector.extract_strided_slice %410 {offsets = [0, 64], sizes = [8, 32], strides = [1, 1]} : vector<8x128xf32> to vector<8x32xf32>
    %414 = vector.extract_strided_slice %410 {offsets = [0, 96], sizes = [8, 32], strides = [1, 1]} : vector<8x128xf32> to vector<8x32xf32>
    %415 = arith.mulf %412, %230 : vector<8x32xf32>
    %416 = arith.mulf %411, %413 : vector<8x32xf32>
    %417 = arith.addf %415, %416 : vector<8x32xf32>
    %418 = math.tanh %417 : vector<8x32xf32>
    %419 = arith.mulf %414, %418 : vector<8x32xf32>
    %c0_60 = arith.constant 0 : index
    %c0_61 = arith.constant 0 : index
    %420 = vector.load %arg7[%c0_60, %c0_61] : memref<64x64xf32, #tpu.memory_space<vmem>>, vector<32x64xf32>
    %cst_62 = arith.constant dense<0.000000e+00> : vector<8x64xf32>
    %421 = tpu.matmul %398, %420, %cst_62 {dimension_numbers = #tpu.dot_dimension_numbers<[1], [0], [0], [1], [0, 0, 1, 1], [], []>} : vector<8x32xf32>, vector<32x64xf32>, vector<8x64xf32> -> vector<8x64xf32>
    %c32_63 = arith.constant 32 : index
    %c0_64 = arith.constant 0 : index
    %422 = vector.load %arg7[%c32_63, %c0_64] : memref<64x64xf32, #tpu.memory_space<vmem>>, vector<32x64xf32>
    %cst_65 = arith.constant dense<0.000000e+00> : vector<8x64xf32>
    %423 = tpu.matmul %419, %422, %cst_65 {dimension_numbers = #tpu.dot_dimension_numbers<[1], [0], [0], [1], [0, 0, 1, 1], [], []>} : vector<8x32xf32>, vector<32x64xf32>, vector<8x64xf32> -> vector<8x64xf32>
    %424 = arith.addf %421, %423 : vector<8x64xf32>
    %c0_66 = arith.constant 0 : index
    %c0_67 = arith.constant 0 : index
    %425 = vector.load %arg8[%c0_66, %c0_67] : memref<1x64xf32, #tpu.memory_space<vmem>>, vector<1x64xf32>
    %426 = vector.broadcast %425 : vector<1x64xf32> to vector<8x64xf32>
    %427 = arith.addf %424, %426 : vector<8x64xf32>
    %cst_68 = arith.constant 0.000000e+00 : f32
    %428 = vector.broadcast %cst_68 : f32 to vector<8x64xf32>
    %429 = arith.maximumf %427, %428 : vector<8x64xf32>
    %c0_69 = arith.constant 0 : index
    %c0_70 = arith.constant 0 : index
    %430 = vector.load %arg9[%c0_69, %c0_70] : memref<64x1xf32, #tpu.memory_space<vmem>>, vector<64x1xf32>
    %cst_71 = arith.constant dense<0.000000e+00> : vector<8x1xf32>
    %431 = tpu.matmul %429, %430, %cst_71 {dimension_numbers = #tpu.dot_dimension_numbers<[1], [0], [0], [1], [0, 0, 1, 1], [], []>} : vector<8x64xf32>, vector<64x1xf32>, vector<8x1xf32> -> vector<8x1xf32>
    %c0_72 = arith.constant 0 : index
    %c0_73 = arith.constant 0 : index
    %432 = vector.load %arg10[%c0_72, %c0_73] : memref<1x1xf32, #tpu.memory_space<vmem>>, vector<1x1xf32>
    %433 = vector.broadcast %432 : vector<1x1xf32> to vector<8x1xf32>
    %434 = arith.addf %431, %433 : vector<8x1xf32>
    %435 = arith.negf %434 : vector<8x1xf32>
    %436 = math.exp %435 : vector<8x1xf32>
    %cst_74 = arith.constant 1.000000e+00 : f32
    %437 = vector.broadcast %cst_74 : f32 to vector<8x1xf32>
    %438 = arith.addf %437, %436 : vector<8x1xf32>
    %439 = arith.divf %437, %438 : vector<8x1xf32>
    %c0_75 = arith.constant 0 : index
    %c0_76 = arith.constant 0 : index
    %440 = vector.load %arg11[%c0_75, %c0_76] : memref<8x1xf32, #tpu.memory_space<vmem>>, vector<8x1xf32>
    tpu.vector_store %arg11[%c0_75, %c0_76], %439 {strides = array<i32>} : memref<8x1xf32, #tpu.memory_space<vmem>>, vector<8x1xf32>,
    return
  }
}

</mosaic_0001>

<bundles_post_ra>
// kernel: tpu_custom_call.1
= control target key start
LH: loop header
LB: loop body
LE: loop exit
PB: predicated region body
PF: predicated region fallthrough
CT: control target
= control target key end

     0   :  { %s5042_s0 = inlined_call_operand.vmem [shape: f32[64,16], index: 0, kind: input, shape index: {}]   ;;  %s5043_s1 = inlined_call_operand.hbm [shape: f32[16,256], index: 1, kind: input, shape index: {}]   ;;  %s5044_s2 = inlined_call_operand.vmem [shape: f32[64,256], index: 2, kind: input, shape index: {}]   ;;  %s5045_s3 = inlined_call_operand.vmem [shape: f32[1,256], index: 3, kind: input, shape index: {}]   ;;  %s5046_s4 = inlined_call_operand.hbm [shape: f32[64,256], index: 4, kind: input, shape index: {}]   ;;  %s5047_s5 = inlined_call_operand.hbm [shape: f32[32,256], index: 5, kind: input, shape index: {}]   ;;  %s5048_s6 = inlined_call_operand.vmem [shape: f32[1,256], index: 6, kind: input, shape index: {}]   ;;  %s5049_s7 = inlined_call_operand.hbm [shape: f32[64,64], index: 7, kind: input, shape index: {}]   ;;  %s5050_s8 = inlined_call_operand.vmem [shape: f32[1,64], index: 8, kind: input, shape index: {}]   ;;  %s5051_s9 = inlined_call_operand.vmem [shape: f32[64,1], index: 9, kind: input, shape index: {}]   ;;  %s5052_s10 = inlined_call_operand.<no memory space> [shape: f32[1,1], index: 10, kind: input, shape index: {}]   ;;  %s5053_s11 = inlined_call_operand.vmem [shape: f32[8,1], index: 11, kind: output, shape index: {}]  }
   0x1   :  { %v16_v0 = vstv %s5052_s10 }
   0x2   :  { %17 = vst [vmem:[#allocation2] sm:$0x1] %v16_v0 }
   0x3   :  { %18 = vsyncpa [#allocation4], 0 }
   0x4   :  { %19 = vsyncpa [#allocation6], 0 }
   0x5   :  { %20 = vsyncpa [#allocation9], 0  ;;  %s4261_s19 = smov [#allocation5]   ;;  %s4262_s21 = smov [#allocation3]  }
   0x6   :  { %s44_s20 = sshll.u32 %s4261_s19, 4  ;;  %s28_s22 = sshll.u32 %s4262_s21, 4  ;;  %s45_s20 = int_to_ptr.vmem [resolvable:$true] %s44_s20  ;;  %s4338_s22 = int_to_ptr.vmem [resolvable:$true] %s28_s22 }
   0x7   :  { %s4167_s25 = scalar_lea.hbm %s5046_s4, 2048 }
   0x8   :  { %p4168_p0 = scmp.ne.s32.totalorder %s5046_s4, %s4167_s25  ;;  %p4171_p1 = scmp.lt.u32.totalorder %s4167_s25, %s5046_s4 }
   0xa   :  { %p4173_p2 = pnand %p4171_p1, %p4168_p0 }
   0xc   :  { %4176 = shalt.err (!%p4173_p2)
}
   0xd   :  { %s4177_s29 = scalar_lea.vmem %s45_s20, 2048  ;;  %p4182_p4 = scmp.lt.s32.totalorder %s45_s20, %s45_s20 }
   0xe   :  { %p4178_p3 = scmp.ne.s32.totalorder %s45_s20, %s4177_s29  ;;  %p4183_p5 = scmp.lt.s32.totalorder %s4177_s29, %s4177_s29 }
  0x10   :  { %p4184_p6 = por %p4183_p5, %p4182_p4 }
  0x12   :  { %p4185_p7 = pnand %p4184_p6, %p4178_p3 }
  0x14   :  { %4188 = shalt.err (!%p4185_p7)
}
  0x15   :  { %s4263_s30 = smov 256   ;;  %s4264_s12 = smov 16  }
  0x16   :  { %50 = dma.hbm_to_vmem [thread:$0]  %s5046_s4, 2048, %s45_s20, [#allocation6], %s4263_s30, %s4263_s30, %s4264_s12  }
  0x17   :  { %s4189_s17 = scalar_lea.hbm %s5043_s1, 512 }
  0x18   :  { %p4190_p8 = scmp.ne.s32.totalorder %s5043_s1, %s4189_s17  ;;  %p4193_p9 = scmp.lt.u32.totalorder %s4189_s17, %s5043_s1 }
  0x1a   :  { %p4195_p10 = pnand %p4193_p9, %p4190_p8 }
  0x1c   :  { %4198 = shalt.err (!%p4195_p10)
}
  0x1d   :  { %s4199_s24 = scalar_lea.vmem %s4338_s22, 512  ;;  %p4204_p12 = scmp.lt.s32.totalorder %s4338_s22, %s4338_s22 }
  0x1e   :  { %p4200_p11 = scmp.ne.s32.totalorder %s4338_s22, %s4199_s24  ;;  %p4205_p13 = scmp.lt.s32.totalorder %s4199_s24, %s4199_s24 }
  0x20   :  { %p4206_p0 = por %p4205_p13, %p4204_p12 }
  0x22   :  { %p4207_p1 = pnand %p4206_p0, %p4200_p11 }
  0x24   :  { %4210 = shalt.err (!%p4207_p1)
}
  0x25   :  { %34 = dma.hbm_to_vmem [thread:$0]  %s5043_s1, 512, %s4338_s22, [#allocation4], %s4263_s30, %s4263_s30, %s4264_s12  }
  0x26   :  { %s4265_s25 = smov [#allocation7]   ;;  %s4266_s27 = smov [#allocation8]  }
  0x27   :  { %s56_s26 = sshll.u32 %s4265_s25, 4  ;;  %s70_s10 = sshll.u32 %s4266_s27, 4  ;;  %s57_s26 = int_to_ptr.vmem [resolvable:$true] %s56_s26  ;;  %s4375_s10 = int_to_ptr.vmem [resolvable:$true] %s70_s10 }
  0x28   :  { %s4211_s13 = scalar_lea.hbm %s5047_s5, 1024 }
  0x29   :  { %p4212_p2 = scmp.ne.s32.totalorder %s5047_s5, %s4211_s13  ;;  %p4215_p3 = scmp.lt.u32.totalorder %s4211_s13, %s5047_s5 }
  0x2b   :  { %p4217_p4 = pnand %p4215_p3, %p4212_p2 }
  0x2d   :  { %4220 = shalt.err (!%p4217_p4)
}
  0x2e   :  { %s4221_s1 = scalar_lea.vmem %s57_s26, 1024  ;;  %p4226_p6 = scmp.lt.s32.totalorder %s57_s26, %s57_s26 }
  0x2f   :  { %p4222_p5 = scmp.ne.s32.totalorder %s57_s26, %s4221_s1  ;;  %p4227_p7 = scmp.lt.s32.totalorder %s4221_s1, %s4221_s1 }
  0x31   :  { %p4228_p8 = por %p4227_p7, %p4226_p6 }
  0x33   :  { %p4229_p9 = pnand %p4228_p8, %p4222_p5 }
  0x35   :  { %4232 = shalt.err (!%p4229_p9)
}
  0x36   :  { %62 = dma.hbm_to_vmem [thread:$0]  %s5047_s5, 1024, %s57_s26, [#allocation6], %s4263_s30, %s4263_s30, %s4264_s12  }
  0x37   :  { %s4233_s23 = scalar_lea.hbm %s5049_s7, 1024 }
  0x38   :  { %p4234_p10 = scmp.ne.s32.totalorder %s5049_s7, %s4233_s23  ;;  %p4237_p11 = scmp.lt.u32.totalorder %s4233_s23, %s5049_s7 }
  0x3a   :  { %p4239_p12 = pnand %p4237_p11, %p4234_p10 }
  0x3c   :  { %4242 = shalt.err (!%p4239_p12)
}
  0x3d   :  { %s4243_s27 = scalar_lea.vmem %s4375_s10, 1024  ;;  %p4248_p0 = scmp.lt.s32.totalorder %s4375_s10, %s4375_s10 }
  0x3e   :  { %p4244_p13 = scmp.ne.s32.totalorder %s4375_s10, %s4243_s27  ;;  %p4249_p1 = scmp.lt.s32.totalorder %s4243_s27, %s4243_s27 }
  0x40   :  { %p4250_p2 = por %p4249_p1, %p4248_p0 }
  0x42   :  { %p4251_p3 = pnand %p4250_p2, %p4244_p13 }
  0x44   :  { %4254 = shalt.err (!%p4251_p3)
}
  0x45   :  { %s4267_s5 = smov 128   ;;  %s4268_s30 = smov 8  }
  0x46   :  { %76 = dma.hbm_to_vmem [thread:$0]  %s5049_s7, 1024, %s4375_s10, [#allocation9], %s4267_s5, %s4267_s5, %s4268_s30  }
  0x47   :  { %4255 = dma.done.wait [#allocation4], 512  }
  0x48   :  { %4256 = vsyncadd [#allocation4], 4294966784 }
  0x49   :  { %4257 = dma.done.wait [#allocation6], 3072  }
  0x4a   :  { %4258 = vsyncadd [#allocation6], 4294964224 }
  0x4b   :  { %4259 = dma.done.wait [#allocation9], 1024  }
  0x4c   :  { %4260 = vsyncadd [#allocation9], 4294966272  ;;  %v4269_v1 = vmov 0.0   ;;  %v164_v2 = vld [vmem:[#allocation3 + $0x8] sm:$0xff]  ;;  %v166_v3 = vld [vmem:[#allocation3 + $0x18] sm:$0xff]  ;;  %vm179_vm0 = vcmask 130048   ;;  %v95_v38 = vlaneseq }
  0x4d   :  { %268 = vmatprep.mubr.f32.mxu0 %v4269_v1  ;;  %304 = vmatprep.mubr.f32.mxu1 %v4269_v1  ;;  %v163_v4 = vld [vmem:[#allocation3] sm:$0xff]  ;;  %v3656_v5 = vpack.c.bf16 %v166_v3, %v164_v2  ;;  %v165_v6 = vld [vmem:[#allocation3 + $0x10] sm:$0xff]  ;;  %v4270_v49 = vmov 0.5   ;;  %vm317_vm2 = vcmask 523264   ;;  %vm794_vm3 = vcmask 261120  }
  0x4e   :  { %v114_v7 = vld [vmem:[%s5044_s2 + $0x8] sm:$0xff]  ;;  %v3658_v8 = vpack.c.bf16 %v165_v6, %v163_v4  ;;  %v116_v9 = vld [vmem:[%s5044_s2 + $0x18] sm:$0xff]  ;;  %v113_v10 = vld [vmem:[%s5044_s2] sm:$0xff]  ;;  %v170_v39 = vshrl.u32 %v95_v38, 7  ;;  %v4524_v40 = vand.u32 127, %v95_v38  ;;  %vm4274_vm4 = vmmov 0  }
  0x4f   :  { %v115_v11 = vld [vmem:[%s5044_s2 + $0x10] sm:$0xff]  ;;  %3657 = vmatprep.subr.bf16.mxu0 %v3656_v5  ;;  %v4423_v12 = vpack.c.bf16 %v116_v9, %v114_v7  ;;  %v118_v13 = vld [vmem:[%s5044_s2 + $0x28] sm:$0xff]  ;;  %v120_v14 = vld [vmem:[%s5044_s2 + $0x38] sm:$0xff]  ;;  %3994 = vmatprep.subr.bf16.mxu1 %v3656_v5  ;;  %vm3397_vm8 = vcmask 7168  }
  0x50   :  { %3659 = vmatpush1.bf16.msra.mxu0 %v3658_v8  ;;  %v155_v15 = vld [vmem:[%s5042_s0] sm:$0xff]  ;;  %v4434_v16 = vpack.c.bf16 %v115_v11, %v113_v10  ;;  %3995 = vmatpush1.bf16.msra.mxu1 %v3658_v8  ;;  %v4437_v17 = vpack.c.bf16 %v120_v14, %v118_v13  ;;  %v119_v19 = vld [vmem:[%s5044_s2 + $0x30] sm:$0xff]  ;;  %v122_v20 = vld [vmem:[%s5044_s2 + $0x48] sm:$0xff]  ;;  %v171_v41 = vsub.s32 0, %v170_v39  ;;  %v97_v43 = vadd.s32 128, %v4524_v40 }
  0x51   :  { %3661 = vmatprep.subr.bf16.mxu0 %v4423_v12  ;;  %v117_v18 = vld [vmem:[%s5044_s2 + $0x20] sm:$0xff]  ;;  %v124_v21 = vld [vmem:[%s5044_s2 + $0x58] sm:$0xff]  ;;  %v156_v22 = vld [vmem:[%s5042_s0 + $0x8] sm:$0xff]  ;;  %v175_v44 = vsub.s32 1, %v170_v39  ;;  %vm108_vm5 = vcmp.ge.s32.totalorder %v4524_v40, 64  ;;  %vm109_vm6 = vcmp.lt.s32.totalorder %v4524_v40, 96 }
  0x52   :  { %v4457_v23 = vpack.c.bf16 %v119_v19, %v117_v18  ;;  %v4460_v24 = vpack.c.bf16 %v124_v21, %v122_v20  ;;  %v121_v25 = vld [vmem:[%s5044_s2 + $0x40] sm:$0xff]  ;;  %v123_v26 = vld [vmem:[%s5044_s2 + $0x50] sm:$0xff]  ;;  %v126_v27 = vld [vmem:[%s5044_s2 + $0x68] sm:$0xff]  ;;  %vm101_vm1 = vcmp.lt.s32.totalorder %v97_v43, 192 }
  0x53   :  { %3406 = vmatmul.mubr.msk.f32.vlgmr.msra.gmra.mrb[0].mxu0 %vm179_vm0, %v155_v15  ;;  %v128_v28 = vld [vmem:[%s5044_s2 + $0x78] sm:$0xff]  ;;  %v157_v29 = vld [vmem:[%s5042_s0 + $0x10] sm:$0xff]  ;;  %v4480_v30 = vpack.c.bf16 %v123_v26, %v121_v25  ;;  %v125_v32 = vld [vmem:[%s5044_s2 + $0x60] sm:$0xff]  ;;  %v4536_v50 = vsel %vm101_vm1, 1.0, %v4270_v49  ;;  %v4541_v57 = vsel %vm101_vm1, 0.0, %v4270_v49 }
  0x54   :  { %3663 = vmatpush1.bf16.msra.mxu0 %v4434_v16  ;;  %274 = vmatprep.mubr.f32.mxu0 %v4269_v1  ;;  %v4483_v31 = vpack.c.bf16 %v128_v28, %v126_v27  ;;  %v127_v33 = vld [vmem:[%s5044_s2 + $0x70] sm:$0xff]  ;;  %v158_v34 = vld [vmem:[%s5042_s0 + $0x18] sm:$0xff]  ;;  %v159_v36 = vld [vmem:[%s5042_s0 + $0x20] sm:$0xff] }
  0x55   :  { %3665 = vmatprep.subr.bf16.mxu0 %v4437_v17  ;;  %v4497_v35 = vpack.c.bf16 %v127_v33, %v125_v32  ;;  %v160_v37 = vld [vmem:[%s5042_s0 + $0x28] sm:$0xff]  ;;  %v167_v42 = vld [vmem:[%s5045_s3] sm:$0x3]  ;;  %s4271_s3 = smov 64   ;;  %vm110_vm7 = vmand %vm108_vm5, %vm109_vm6 }
  0x56   :  { %v4530_v45 = vrot.slane %v167_v42, %v171_v41  ;;  %v4532_v46 = vrot.slane %v167_v42, %v175_v44 }
  0x57   :  { %3407 = vmatmul.mubr.msk.f32.gmra.mrb[2].mxu0 %vm179_vm0, %v156_v22 }
  0x58   :  { %280 = vmatprep.mubr.f32.mxu0 %v4269_v1  ;;  %3667 = vmatpush1.bf16.msra.mxu0 %v4457_v23 }
  0x59   :  { %3669 = vmatprep.subr.bf16.mxu0 %v4460_v24 }
  0x5b   :  { %3408 = vmatmul.mubr.msk.f32.gmra.mrb[4].mxu0 %vm179_vm0, %v157_v29 }
  0x5c   :  { %286 = vmatprep.mubr.f32.mxu0 %v4269_v1  ;;  %3671 = vmatpush1.bf16.msra.mxu0 %v4480_v30 }
  0x5d   :  { %3673 = vmatprep.subr.bf16.mxu0 %v4483_v31 }
  0x5f   :  { %3409 = vmatmul.mubr.msk.f32.gmra.mrb[6].mxu0 %vm179_vm0, %v158_v34 }
  0x60   :  { %292 = vmatprep.mubr.f32.mxu0 %v4269_v1  ;;  %3675 = vmatpush1.bf16.msra.mxu0 %v4497_v35 }
  0x61   :  { %3677 = vmatprep.subr.bf16.mxu0 %v4423_v12 }
  0x63   :  { %3410 = vmatmul.mubr.msk.f32.gmra.mrb[8].mxu0 %vm179_vm0, %v159_v36 }
  0x64   :  { %298 = vmatprep.mubr.f32.mxu0 %v4269_v1 }
  0x67   :  { %3411 = vmatmul.mubr.msk.f32.gmra.mrb[10].mxu0 %vm179_vm0, %v160_v37 }
  0x68   :  { %385 = vmatprep.mubr.f32.mxu0 %v4269_v1 }
  0x6b   :  { %386 = vmatmul.mubr.f32.vlgmr.msra.gmra.mrb[0].mxu0 %v4269_v1 }
  0x6c   :  { %3679 = vmatpush1.bf16.msra.mxu0 %v4434_v16  ;;  %480 = vmatprep.mubr.f32.mxu0 %v4269_v1 }
  0x6d   :  { %3681 = vmatprep.subr.bf16.mxu0 %v4437_v17 }
  0x70   :  { %3683 = vmatpush1.bf16.msra.mxu0 %v4457_v23 }
  0x71   :  { %3685 = vmatprep.subr.bf16.mxu0 %v4460_v24 }
  0x74   :  { %3687 = vmatpush1.bf16.msra.mxu0 %v4480_v30 }
  0x75   :  { %3689 = vmatprep.subr.bf16.mxu0 %v4483_v31 }
  0x78   :  { %3691 = vmatpush1.bf16.msra.mxu0 %v4497_v35 }
  0x79   :  { %3693 = vmatprep.subr.bf16.mxu0 %v4423_v12 }
 0x13e   :  { %v387_v47 = vpop.f32.mrb[0].mxu0 }
 0x13f   :  { %v3996_v48 = vadd.f32 %v387_v47, %v4530_v45  ;;  %v389_v51 = vpop.f32.mrb[1].mxu0 }
 0x140   :  { %v3997_v52 = vadd.f32 %v389_v51, %v4532_v46 }
 0x141   :  { %v394_v53 = vmul.f32 0.5, %v3996_v48 }
 0x142   :  { %v395_v54 = vmul.f32 %v3997_v52, %v4536_v50 }
 0x143   :  { %4079 = vtanh.f32 %v394_v53 }
 0x144   :  { %4081 = vtanh.f32 %v395_v54 }
 0x14d   :  { %v4080_v55 = vpop.eup %4079 }
 0x14e   :  { %v4082_v56 = vpop.eup %4081  ;;  %v398_v58 = vmul.f32 0.5, %v4080_v55 }
 0x14f   :  { %v399_v59 = vmul.f32 %v4082_v56, %v4536_v50 }
 0x150   :  { %v400_v60 = vadd.f32 0.5, %v398_v58 }
 0x151   :  { %v401_v61 = vadd.f32 %v399_v59, %v4541_v57 }
 0x152   :  { %v402_v63 = vmul.f32 0.0, %v400_v60 }
 0x153   :  { %v403_v62 = vmul.f32 %v401_v61, %v400_v60 }
 0x155   :  { %405 = vrot.lane.b32.xlu0 %v403_v62, %s4271_s3 }
 0x1c7   :  { %v406_v0 = vpop.permute.xlu0 %405 }
 0x1c8   :  { %v408_v2 = vadd.f32 %v406_v0, %v402_v63 }
 0x1ca   :  { %4083 = vtanh.f32 %v408_v2 }
 0x1d4   :  { %v4084_v3 = vpop.eup %4083 }
 0x1d5   :  { %v4546_v4 = vmul.f32 %v4084_v3, %v401_v61 }
 0x1d7   :  { %412 = vrot.lane.b32.xlu0 %v4546_v4, %s4271_s3 }
 0x249   :  { %v4550_v5 = vpop.permute.xlu0 %412 }
 0x24a   :  { %3414 = vmatmul.mubr.msk.f32.vlgmr.msra.gmra.mrb[2].mxu0 %vm317_vm2, %v4550_v5 }
 0x24b   :  { %3695 = vmatpush1.bf16.msra.mxu0 %v4434_v16  ;;  %575 = vmatprep.mubr.f32.mxu0 %v4269_v1 }
 0x24c   :  { %3697 = vmatprep.subr.bf16.mxu0 %v4437_v17 }
 0x24f   :  { %3699 = vmatpush1.bf16.msra.mxu0 %v4457_v23 }
 0x250   :  { %3701 = vmatprep.subr.bf16.mxu0 %v4460_v24 }
 0x253   :  { %3703 = vmatpush1.bf16.msra.mxu0 %v4480_v30 }
 0x254   :  { %3705 = vmatprep.subr.bf16.mxu0 %v4483_v31 }
 0x257   :  { %3707 = vmatpush1.bf16.msra.mxu0 %v4497_v35 }
 0x258   :  { %3709 = vmatprep.subr.bf16.mxu0 %v4423_v12 }
 0x31d   :  { %v482_v6 = vpop.f32.mrb[2].mxu0 }
 0x31e   :  { %v3998_v7 = vadd.f32 %v482_v6, %v4530_v45  ;;  %v484_v8 = vpop.f32.mrb[3].mxu0 }
 0x31f   :  { %v3999_v9 = vadd.f32 %v484_v8, %v4532_v46 }
 0x320   :  { %v489_v10 = vmul.f32 0.5, %v3998_v7 }
 0x321   :  { %v490_v11 = vmul.f32 %v3999_v9, %v4536_v50 }
 0x322   :  { %4085 = vtanh.f32 %v489_v10 }
 0x323   :  { %4087 = vtanh.f32 %v490_v11 }
 0x32c   :  { %v4086_v13 = vpop.eup %4085 }
 0x32d   :  { %v4088_v14 = vpop.eup %4087  ;;  %v493_v15 = vmul.f32 0.5, %v4086_v13 }
 0x32e   :  { %v494_v18 = vmul.f32 %v4088_v14, %v4536_v50 }
 0x32f   :  { %v495_v19 = vadd.f32 0.5, %v493_v15 }
 0x330   :  { %v496_v20 = vadd.f32 %v494_v18, %v4541_v57 }
 0x331   :  { %v497_v22 = vmul.f32 %v495_v19, %v408_v2 }
 0x332   :  { %v498_v21 = vmul.f32 %v496_v20, %v495_v19 }
 0x334   :  { %500 = vrot.lane.b32.xlu1 %v498_v21, %s4271_s3 }
 0x3a6   :  { %v501_v25 = vpop.permute.xlu1 %500 }
 0x3a7   :  { %v503_v26 = vadd.f32 %v501_v25, %v497_v22 }
 0x3a9   :  { %4089 = vtanh.f32 %v503_v26 }
 0x3b3   :  { %v4090_v27 = vpop.eup %4089 }
 0x3b4   :  { %v4569_v28 = vmul.f32 %v4090_v27, %v496_v20 }
 0x3b6   :  { %507 = vrot.lane.b32.xlu1 %v4569_v28, %s4271_s3 }
 0x428   :  { %v4573_v29 = vpop.permute.xlu1 %507 }
 0x429   :  { %3415 = vmatmul.mubr.msk.f32.vlgmr.msra.gmra.mrb[4].mxu0 %vm317_vm2, %v4573_v29 }
 0x42a   :  { %3711 = vmatpush1.bf16.msra.mxu0 %v4434_v16  ;;  %670 = vmatprep.mubr.f32.mxu0 %v4269_v1 }
 0x42b   :  { %3713 = vmatprep.subr.bf16.mxu0 %v4437_v17 }
 0x42e   :  { %3715 = vmatpush1.bf16.msra.mxu0 %v4457_v23 }
 0x42f   :  { %3717 = vmatprep.subr.bf16.mxu0 %v4460_v24 }
 0x432   :  { %3719 = vmatpush1.bf16.msra.mxu0 %v4480_v30 }
 0x433   :  { %3721 = vmatprep.subr.bf16.mxu0 %v4483_v31 }
 0x436   :  { %3723 = vmatpush1.bf16.msra.mxu0 %v4497_v35 }
 0x437   :  { %3725 = vmatprep.subr.bf16.mxu0 %v4423_v12 }
 0x4fc   :  { %v577_v32 = vpop.f32.mrb[4].mxu0 }
 0x4fd   :  { %v4000_v33 = vadd.f32 %v577_v32, %v4530_v45  ;;  %v579_v34 = vpop.f32.mrb[5].mxu0 }
 0x4fe   :  { %v4001_v36 = vadd.f32 %v579_v34, %v4532_v46 }
 0x4ff   :  { %v584_v37 = vmul.f32 0.5, %v4000_v33 }
 0x500   :  { %v585_v38 = vmul.f32 %v4001_v36, %v4536_v50 }
 0x501   :  { %4091 = vtanh.f32 %v584_v37 }
 0x502   :  { %4093 = vtanh.f32 %v585_v38 }
 0x50b   :  { %v4092_v39 = vpop.eup %4091 }
 0x50c   :  { %v4094_v41 = vpop.eup %4093  ;;  %v588_v42 = vmul.f32 0.5, %v4092_v39  ;;  %v161_v39 = vld [vmem:[%s5042_s0 + $0x30] sm:$0xff] }
 0x50d   :  { %v589_v43 = vmul.f32 %v4094_v41, %v4536_v50  ;;  %v130_v41 = vld [vmem:[#allocation5 + $0x8] sm:$0xff]  ;;  %3412 = vmatmul.mubr.msk.f32.vlgmr.msra.gmra.mrb[0].mxu1 %vm179_vm0, %v161_v39  ;;  %v140_v39 = vld [vmem:[#allocation5 + $0x58] sm:$0xff] }
 0x50e   :  { %v590_v44 = vadd.f32 0.5, %v588_v42  ;;  %v132_v42 = vld [vmem:[#allocation5 + $0x18] sm:$0xff]  ;;  %310 = vmatprep.mubr.f32.mxu1 %v4269_v1 }
 0x50f   :  { %v591_v47 = vadd.f32 %v589_v43, %v4541_v57  ;;  %v4642_v43 = vpack.c.bf16 %v132_v42, %v130_v41  ;;  %v137_v41 = vld [vmem:[#allocation5 + $0x40] sm:$0xff] }
 0x510   :  { %v592_v51 = vmul.f32 %v590_v44, %v503_v26 }
 0x511   :  { %v593_v48 = vmul.f32 %v591_v47, %v590_v44  ;;  %v129_v44 = vld [vmem:[#allocation5] sm:$0xff]  ;;  %3741 = vmatprep.subr.bf16.mxu1 %v4642_v43 }
 0x513   :  { %595 = vrot.lane.b32.xlu0 %v593_v48, %s4271_s3  ;;  %v162_v48 = vld [vmem:[%s5042_s0 + $0x38] sm:$0xff]  ;;  %s4272_s0 = smov 32  }
 0x514   :  { %3413 = vmatmul.mubr.msk.f32.gmra.mrb[2].mxu1 %vm179_vm0, %v162_v48 }
 0x515   :  { %861 = vmatprep.mubr.f32.mxu1 %v4269_v1 }
 0x585   :  { %v596_v52 = vpop.permute.xlu0 %595 }
 0x586   :  { %v598_v53 = vadd.f32 %v596_v52, %v592_v51  ;;  %v134_v52 = vld [vmem:[#allocation5 + $0x28] sm:$0xff] }
 0x588   :  { %4095 = vtanh.f32 %v598_v53 }
 0x592   :  { %v4096_v54 = vpop.eup %4095 }
 0x593   :  { %v4592_v55 = vmul.f32 %v4096_v54, %v591_v47  ;;  %v131_v47 = vld [vmem:[#allocation5 + $0x10] sm:$0xff]  ;;  %v133_v54 = vld [vmem:[#allocation5 + $0x20] sm:$0xff] }
 0x594   :  { %v4647_v51 = vpack.c.bf16 %v131_v47, %v129_v44 }
 0x595   :  { %602 = vrot.lane.b32.xlu1 %v4592_v55, %s4271_s3 }
 0x596   :  { %3743 = vmatpush1.bf16.msra.mxu1 %v4647_v51 }
 0x607   :  { %v4596_v56 = vpop.permute.xlu1 %602 }
 0x608   :  { %3416 = vmatmul.mubr.msk.f32.vlgmr.msra.gmra.mrb[6].mxu0 %vm317_vm2, %v4596_v56 }
 0x609   :  { %3727 = vmatpush1.bf16.msra.mxu0 %v4434_v16  ;;  %765 = vmatprep.mubr.f32.mxu0 %v4269_v1 }
 0x60a   :  { %3729 = vmatprep.subr.bf16.mxu0 %v4437_v17 }
 0x60d   :  { %3731 = vmatpush1.bf16.msra.mxu0 %v4457_v23 }
 0x60e   :  { %3733 = vmatprep.subr.bf16.mxu0 %v4460_v24 }
 0x611   :  { %3735 = vmatpush1.bf16.msra.mxu0 %v4480_v30 }
 0x612   :  { %3737 = vmatprep.subr.bf16.mxu0 %v4483_v31 }
 0x615   :  { %3739 = vmatpush1.bf16.msra.mxu0 %v4497_v35 }
 0x616   :  { %3773 = vmatprep.subr.bf16.mxu0 %v4423_v12 }
 0x6db   :  { %v672_v58 = vpop.f32.mrb[6].mxu0 }
 0x6dc   :  { %v4002_v59 = vadd.f32 %v672_v58, %v4530_v45  ;;  %v674_v60 = vpop.f32.mrb[7].mxu0 }
 0x6dd   :  { %v4003_v61 = vadd.f32 %v674_v60, %v4532_v46 }
 0x6de   :  { %v679_v62 = vmul.f32 0.5, %v4002_v59  ;;  %v135_v59 = vld [vmem:[#allocation5 + $0x30] sm:$0xff] }
 0x6df   :  { %v680_v63 = vmul.f32 %v4003_v61, %v4536_v50  ;;  %v4654_v60 = vpack.c.bf16 %v135_v59, %v133_v54  ;;  %v141_v59 = vld [vmem:[#allocation5 + $0x60] sm:$0xff] }
 0x6e0   :  { %4097 = vtanh.f32 %v679_v62 }
 0x6e1   :  { %4099 = vtanh.f32 %v680_v63 }
 0x6ea   :  { %v4098_v0 = vpop.eup %4097 }
 0x6eb   :  { %v4100_v2 = vpop.eup %4099  ;;  %v683_v3 = vmul.f32 0.5, %v4098_v0 }
 0x6ec   :  { %v684_v6 = vmul.f32 %v4100_v2, %v4536_v50 }
 0x6ed   :  { %v685_v7 = vadd.f32 0.5, %v683_v3 }
 0x6ee   :  { %v686_v8 = vadd.f32 %v684_v6, %v4541_v57 }
 0x6ef   :  { %v687_v10 = vmul.f32 %v685_v7, %v598_v53  ;;  %v136_v53 = vld [vmem:[#allocation5 + $0x38] sm:$0xff] }
 0x6f0   :  { %v688_v9 = vmul.f32 %v686_v8, %v685_v7  ;;  %v4651_v58 = vpack.c.bf16 %v136_v53, %v134_v52  ;;  %v142_v52 = vld [vmem:[#allocation5 + $0x68] sm:$0xff]  ;;  %v144_v53 = vld [vmem:[#allocation5 + $0x78] sm:$0xff] }
 0x6f1   :  { %v4707_v54 = vpack.c.bf16 %v144_v53, %v142_v52 }
 0x6f2   :  { %690 = vrot.lane.b32.xlu0 %v688_v9, %s4271_s3  ;;  %3745 = vmatprep.subr.bf16.mxu1 %v4651_v58 }
 0x6f3   :  { %3747 = vmatpush1.bf16.msra.mxu1 %v4654_v60 }
 0x764   :  { %v691_v11 = vpop.permute.xlu0 %690 }
 0x765   :  { %v693_v13 = vadd.f32 %v691_v11, %v687_v10 }
 0x767   :  { %4101 = vtanh.f32 %v693_v13 }
 0x771   :  { %v4102_v14 = vpop.eup %4101 }
 0x772   :  { %v4615_v15 = vmul.f32 %v4102_v14, %v686_v8 }
 0x774   :  { %697 = vrot.lane.b32.xlu1 %v4615_v15, %s4271_s3 }
 0x7e6   :  { %v4619_v18 = vpop.permute.xlu1 %697 }
 0x7e7   :  { %3417 = vmatmul.mubr.msk.f32.vlgmr.msra.gmra.mrb[8].mxu0 %vm317_vm2, %v4619_v18 }
 0x7e8   :  { %3775 = vmatpush1.bf16.msra.mxu0 %v4434_v16  ;;  %1153 = vmatprep.mubr.f32.mxu0 %v4269_v1 }
 0x7e9   :  { %3777 = vmatprep.subr.bf16.mxu0 %v4437_v17 }
 0x7ec   :  { %3779 = vmatpush1.bf16.msra.mxu0 %v4457_v23 }
 0x7ed   :  { %3781 = vmatprep.subr.bf16.mxu0 %v4460_v24 }
 0x7f0   :  { %3783 = vmatpush1.bf16.msra.mxu0 %v4480_v30 }
 0x7f1   :  { %3785 = vmatprep.subr.bf16.mxu0 %v4483_v31 }
 0x7f4   :  { %3787 = vmatpush1.bf16.msra.mxu0 %v4497_v35 }
 0x7f5   :  { %3821 = vmatprep.subr.bf16.mxu0 %v4423_v12 }
 0x8ba   :  { %v767_v19 = vpop.f32.mrb[8].mxu0 }
 0x8bb   :  { %v4004_v20 = vadd.f32 %v767_v19, %v4530_v45  ;;  %v769_v21 = vpop.f32.mrb[9].mxu0 }
 0x8bc   :  { %v4005_v22 = vadd.f32 %v769_v21, %v4532_v46 }
 0x8bd   :  { %v774_v25 = vmul.f32 0.5, %v4004_v20 }
 0x8be   :  { %v775_v26 = vmul.f32 %v4005_v22, %v4536_v50 }
 0x8bf   :  { %4103 = vtanh.f32 %v774_v25 }
 0x8c0   :  { %4105 = vtanh.f32 %v775_v26 }
 0x8c9   :  { %v4104_v27 = vpop.eup %4103 }
 0x8ca   :  { %v4106_v32 = vpop.eup %4105  ;;  %v778_v33 = vmul.f32 0.5, %v4104_v27 }
 0x8cb   :  { %v779_v34 = vmul.f32 %v4106_v32, %v4536_v50  ;;  %v306_v32 = vpop.f32.mrb[0].mxu1 }
 0x8cc   :  { %v780_v36 = vadd.f32 0.5, %v778_v33  ;;  %v308_v33 = vpop.f32.mrb[1].mxu1 }
 0x8cd   :  { %v781_v37 = vadd.f32 %v779_v34, %v4541_v57 }
 0x8ce   :  { %v782_v61 = vmul.f32 %v780_v36, %v693_v13 }
 0x8cf   :  { %v783_v38 = vmul.f32 %v781_v37, %v780_v36 }
 0x8d1   :  { %785 = vrot.lane.b32.xlu0 %v783_v38, %s4271_s3  ;;  %v138_v38 = vld [vmem:[#allocation5 + $0x48] sm:$0xff] }
 0x8d2   :  { %v4698_v42 = vpack.c.bf16 %v140_v39, %v138_v38 }
 0x8d4   :  { %3749 = vmatprep.subr.bf16.mxu1 %v4698_v42 }
 0x943   :  { %v786_v62 = vpop.permute.xlu0 %785 }
 0x944   :  { %v788_v63 = vadd.f32 %v786_v62, %v782_v61  ;;  %v143_v61 = vld [vmem:[#allocation5 + $0x70] sm:$0xff] }
 0x945   :  { %v4709_v62 = vpack.c.bf16 %v143_v61, %v141_v59 }
 0x946   :  { %4107 = vtanh.f32 %v788_v63 }
 0x950   :  { %v4108_v0 = vpop.eup %4107 }
 0x951   :  { %v4660_v2 = vmul.f32 %v4108_v0, %v781_v37 }
 0x953   :  { %792 = vrot.lane.b32.xlu1 %v4660_v2, %s4271_s3 }
 0x9c5   :  { %v793_v3 = vpop.permute.xlu1 %792 }
 0x9c6   :  { %3418 = vmatmul.mubr.msk.f32.vlgmr.msra.gmra.mrb[4].mxu1 %vm794_vm3, %v793_v3  ;;  %3422 = vmatmul.mubr.msk.f32.vlgmr.msra.gmra.mrb[10].mxu0 %vm317_vm2, %v793_v3 }
 0x9c7   :  { %3823 = vmatpush1.bf16.msra.mxu0 %v4434_v16  ;;  %1540 = vmatprep.mubr.f32.mxu0 %v4269_v1 }
 0x9c8   :  { %3825 = vmatprep.subr.bf16.mxu0 %v4437_v17  ;;  %935 = vmatprep.mubr.f32.mxu1 %v4269_v1 }
 0x9cb   :  { %3827 = vmatpush1.bf16.msra.mxu0 %v4457_v23 }
 0x9cc   :  { %3829 = vmatprep.subr.bf16.mxu0 %v4460_v24 }
 0x9cf   :  { %3831 = vmatpush1.bf16.msra.mxu0 %v4480_v30 }
 0x9d0   :  { %3833 = vmatprep.subr.bf16.mxu0 %v4483_v31 }
 0x9d3   :  { %3835 = vmatpush1.bf16.msra.mxu0 %v4497_v35 }
 0x9d4   :  { %3869 = vmatprep.subr.bf16.mxu0 %v4423_v12 }
 0xa99   :  { %v1155_v6 = vpop.f32.mrb[10].mxu0 }
 0xa9a   :  { %v4006_v7 = vadd.f32 %v1155_v6, %v4530_v45  ;;  %v1157_v8 = vpop.f32.mrb[11].mxu0 }
 0xa9b   :  { %v4007_v9 = vadd.f32 %v1157_v8, %v4532_v46 }
 0xa9c   :  { %v1162_v10 = vmul.f32 0.5, %v4006_v7 }
 0xa9d   :  { %v1163_v11 = vmul.f32 %v4007_v9, %v4536_v50 }
 0xa9e   :  { %4109 = vtanh.f32 %v1162_v10 }
 0xa9f   :  { %4111 = vtanh.f32 %v1163_v11 }
 0xaa8   :  { %v4110_v13 = vpop.eup %4109 }
 0xaa9   :  { %v4112_v14 = vpop.eup %4111  ;;  %v1166_v19 = vmul.f32 0.5, %v4110_v13 }
 0xaaa   :  { %v1167_v20 = vmul.f32 %v4112_v14, %v4536_v50 }
 0xaab   :  { %v1168_v21 = vadd.f32 0.5, %v1166_v19 }
 0xaac   :  { %v1169_v22 = vadd.f32 %v1167_v20, %v4541_v57  ;;  %v312_v20 = vpop.f32.mrb[2].mxu1 }
 0xaad   :  { %v1170_v25 = vmul.f32 %v1168_v21, %v788_v63 }
 0xaae   :  { %v1171_v12 = vmul.f32 %v1169_v22, %v1168_v21  ;;  %v314_v21 = vpop.f32.mrb[3].mxu1 }
 0xab0   :  { %1173 = vrot.lane.b32.xlu0 %v1171_v12, %s4271_s3 }
 0xb22   :  { %v1174_v26 = vpop.permute.xlu0 %1173 }
 0xb23   :  { %v1176_v27 = vadd.f32 %v1174_v26, %v1170_v25 }
 0xb25   :  { %4113 = vtanh.f32 %v1176_v27 }
 0xb2f   :  { %v4114_v34 = vpop.eup %4113 }
 0xb30   :  { %v4682_v36 = vmul.f32 %v4114_v34, %v1169_v22 }
 0xb32   :  { %1180 = vrot.lane.b32.xlu1 %v4682_v36, %s4271_s3 }
 0xba4   :  { %v4686_v37 = vpop.permute.xlu1 %1180 }
 0xba5   :  { %3427 = vmatmul.mubr.msk.f32.vlgmr.msra.gmra.mrb[12].mxu0 %vm317_vm2, %v4686_v37 }
 0xba6   :  { %3871 = vmatpush1.bf16.msra.mxu0 %v4434_v16  ;;  %1927 = vmatprep.mubr.f32.mxu0 %v4269_v1  ;;  %v139_v16 = vld [vmem:[#allocation5 + $0x50] sm:$0xff] }
 0xba7   :  { %3873 = vmatprep.subr.bf16.mxu0 %v4437_v17  ;;  %v4700_v44 = vpack.c.bf16 %v139_v16, %v137_v41  ;;  %v307_v17 = vadd.f32 %v306_v32, %v4530_v45 }
 0xba9   :  { %3751 = vmatpush1.bf16.msra.mxu1 %v4700_v44 }
 0xbaa   :  { %3875 = vmatpush1.bf16.msra.mxu0 %v4457_v23  ;;  %v309_v23 = vadd.f32 %v308_v33, %v4532_v46  ;;  %3753 = vmatprep.subr.bf16.mxu1 %v4707_v54 }
 0xbab   :  { %3877 = vmatprep.subr.bf16.mxu0 %v4460_v24 }
 0xbad   :  { %3755 = vmatpush1.bf16.msra.mxu1 %v4709_v62 }
 0xbae   :  { %3879 = vmatpush1.bf16.msra.mxu0 %v4480_v30  ;;  %3757 = vmatprep.subr.bf16.mxu1 %v4698_v42 }
 0xbaf   :  { %3881 = vmatprep.subr.bf16.mxu0 %v4483_v31 }
 0xbb2   :  { %3883 = vmatpush1.bf16.msra.mxu0 %v4497_v35 }
 0xc78   :  { %v1542_v24 = vpop.f32.mrb[12].mxu0 }
 0xc79   :  { %v1547_v30 = vadd.f32 %v1542_v24, %v307_v17  ;;  %v1544_v31 = vpop.f32.mrb[13].mxu0 }
 0xc7a   :  { %v1548_v35 = vadd.f32 %v1544_v31, %v309_v23 }
 0xc7b   :  { %v1549_v47 = vmul.f32 0.5, %v1547_v30  ;;  %v4273_v30 = vmov 0.0|0.0  }
 0xc7c   :  { %v1550_v48 = vmul.f32 %v1548_v35, %v4536_v50  ;;  %3958 = vmatprep.subr.bf16.mxu0 %v4273_v30  ;;  %v147_v35 = vld [vmem:[#allocation7 + $0x20] sm:$0xff] }
 0xc7d   :  { %4115 = vtanh.f32 %v1549_v47  ;;  %v148_v47 = vld [vmem:[#allocation7 + $0x30] sm:$0xff] }
 0xc7e   :  { %4117 = vtanh.f32 %v1550_v48  ;;  %v4807_v48 = vpack.c.bf16 %v148_v47, %v147_v35 }
 0xc87   :  { %v4116_v63 = vpop.eup %4115 }
 0xc88   :  { %v4118_v0 = vpop.eup %4117  ;;  %v1553_v3 = vmul.f32 0.5, %v4116_v63 }
 0xc89   :  { %v1554_v6 = vmul.f32 %v4118_v0, %v4536_v50 }
 0xc8a   :  { %v1555_v7 = vadd.f32 0.5, %v1553_v3 }
 0xc8b   :  { %v1556_v8 = vadd.f32 %v1554_v6, %v4541_v57 }
 0xc8c   :  { %v1557_v10 = vmul.f32 %v1555_v7, %v1176_v27 }
 0xc8d   :  { %v1558_v9 = vmul.f32 %v1556_v8, %v1555_v7 }
 0xc8f   :  { %1560 = vrot.lane.b32.xlu0 %v1558_v9, %s4271_s3 }
 0xc93   :  { %867 = vrot.lane.b32.xlu0 %v4615_v15, %s4272_s0 }
 0xd01   :  { %v1561_v11 = vpop.permute.xlu0 %1560 }
 0xd02   :  { %v4719_v13 = vadd.f32 %v1561_v11, %v1557_v10 }
 0xd04   :  { %4119 = vtanh.f32 %v4719_v13 }
 0xd05   :  { %v868_v14 = vpop.permute.xlu0 %867 }
 0xd06   :  { %3419 = vmatmul.mubr.msk.f32.vlgmr.msra.gmra.mrb[4].mxu1 %vm794_vm3, %v868_v14 }
 0xd07   :  { %3759 = vmatpush1.bf16.msra.mxu1 %v4700_v44  ;;  %1009 = vmatprep.mubr.f32.mxu1 %v4269_v1 }
 0xd08   :  { %3761 = vmatprep.subr.bf16.mxu1 %v4707_v54 }
 0xd0b   :  { %3763 = vmatpush1.bf16.msra.mxu1 %v4709_v62 }
 0xd0c   :  { %3765 = vmatprep.subr.bf16.mxu1 %v4642_v43 }
 0xd0e   :  { %v4120_v15 = vpop.eup %4119 }
 0xd0f   :  { %v1565_v19 = vmul.f32 %v4120_v15, %v1556_v8 }
 0xd11   :  { %1567 = vrot.lane.b32.xlu1 %v1565_v19, %s4271_s3 }
 0xd15   :  { %941 = vrot.lane.b32.xlu1 %v4660_v2, %s4272_s0 }
 0xd19   :  { %1254 = vrot.lane.b32.xlu1 %v4592_v55, %s4272_s0  ;;  %v313_v55 = vadd.f32 %v312_v20, %v4530_v45 }
 0xd1d   :  { %1641 = vrot.lane.b32.xlu1 %v4569_v28, %s4272_s0 }
 0xd83   :  { %v4735_v22 = vpop.permute.xlu1 %1567 }
 0xd84   :  { %3432 = vmatmul.mubr.msk.f32.vlgmr.msra.gmra.mrb[14].mxu0 %vm317_vm2, %v4735_v22 }
 0xd85   :  { %3601 = vmatprep.mubr.msk.f32.mxu0 %vm4274_vm4, %v4269_v1 }
 0xd87   :  { %v942_v12 = vpop.permute.xlu1 %941 }
 0xd88   :  { %3420 = vmatmul.mubr.msk.f32.vlgmr.msra.gmra.mrb[6].mxu1 %vm794_vm3, %v942_v12 }
 0xd89   :  { %3767 = vmatpush1.bf16.msra.mxu1 %v4647_v51  ;;  %1081 = vmatprep.mubr.f32.mxu1 %v4269_v1 }
 0xd8a   :  { %3769 = vmatprep.subr.bf16.mxu1 %v4651_v58 }
 0xd8b   :  { %v1255_v28 = vpop.permute.xlu1 %1254 }
 0xd8d   :  { %3771 = vmatpush1.bf16.msra.mxu1 %v4654_v60 }
 0xd8e   :  { %3789 = vmatprep.subr.bf16.mxu1 %v4642_v43 }
 0xd8f   :  { %v1642_v31 = vpop.permute.xlu1 %1641 }
 0xd90   :  { %3421 = vmatmul.mubr.msk.f32.vlgmr.msra.gmra.mrb[6].mxu1 %vm794_vm3, %v4619_v18  ;;  %v315_v18 = vadd.f32 %v314_v21, %v4532_v46 }
 0xd91   :  { %3791 = vmatpush1.bf16.msra.mxu1 %v4647_v51  ;;  %1248 = vmatprep.mubr.f32.mxu1 %v4269_v1 }
 0xd92   :  { %3793 = vmatprep.subr.bf16.mxu1 %v4651_v58 }
 0xd95   :  { %3795 = vmatpush1.bf16.msra.mxu1 %v4654_v60 }
 0xd96   :  { %3797 = vmatprep.subr.bf16.mxu1 %v4698_v42 }
 0xd98   :  { %3423 = vmatmul.mubr.msk.f32.vlgmr.msra.gmra.mrb[8].mxu1 %vm794_vm3, %v4686_v37 }
 0xd99   :  { %3799 = vmatpush1.bf16.msra.mxu1 %v4700_v44  ;;  %1322 = vmatprep.mubr.f32.mxu1 %v4269_v1 }
 0xd9a   :  { %3801 = vmatprep.subr.bf16.mxu1 %v4707_v54 }
 0xd9d   :  { %3803 = vmatpush1.bf16.msra.mxu1 %v4709_v62 }
 0xd9e   :  { %3805 = vmatprep.subr.bf16.mxu1 %v4698_v42 }
 0xda0   :  { %3424 = vmatmul.mubr.msk.f32.vlgmr.msra.gmra.mrb[8].mxu1 %vm794_vm3, %v1255_v28 }
 0xda1   :  { %3807 = vmatpush1.bf16.msra.mxu1 %v4700_v44  ;;  %1396 = vmatprep.mubr.f32.mxu1 %v4269_v1 }
 0xda2   :  { %3809 = vmatprep.subr.bf16.mxu1 %v4707_v54 }
 0xda5   :  { %3811 = vmatpush1.bf16.msra.mxu1 %v4709_v62 }
 0xda6   :  { %3813 = vmatprep.subr.bf16.mxu1 %v4642_v43 }
 0xe57   :  { %v1929_v2 = vpop.f32.mrb[14].mxu0 }
 0xe58   :  { %v1934_v25 = vadd.f32 %v1929_v2, %v313_v55  ;;  %v1931_v26 = vpop.f32.mrb[15].mxu0 }
 0xe59   :  { %v1935_v27 = vadd.f32 %v1931_v26, %v315_v18 }
 0xe5a   :  { %v1936_v32 = vmul.f32 0.5, %v1934_v25 }
 0xe5b   :  { %v1937_v33 = vmul.f32 %v1935_v27, %v4536_v50 }
 0xe5c   :  { %4121 = vtanh.f32 %v1936_v32 }
 0xe5d   :  { %4123 = vtanh.f32 %v1937_v33 }
 0xe66   :  { %v4122_v34 = vpop.eup %4121 }
 0xe67   :  { %v4124_v37 = vpop.eup %4123  ;;  %v1940_v38 = vmul.f32 0.5, %v4122_v34 }
 0xe68   :  { %v1941_v39 = vmul.f32 %v4124_v37, %v4536_v50 }
 0xe69   :  { %v1942_v41 = vadd.f32 0.5, %v1940_v38 }
 0xe6a   :  { %v1943_v16 = vadd.f32 %v1941_v39, %v4541_v57 }
 0xe6b   :  { %v1944_v46 = vmul.f32 %v1942_v41, %v4719_v13 }
 0xe6c   :  { %v1945_v45 = vmul.f32 %v1943_v16, %v1942_v41 }
 0xe6e   :  { %1947 = vrot.lane.b32.xlu0 %v1945_v45, %s4271_s3 }
 0xe72   :  { %1328 = vrot.lane.b32.xlu0 %v4682_v36, %s4272_s0  ;;  %v146_v36 = vld [vmem:[#allocation7 + $0x10] sm:$0xff] }
 0xe76   :  { %1715 = vrot.lane.b32.xlu0 %v1565_v19, %s4272_s0 }
 0xe7a   :  { %2029 = vrot.lane.b32.xlu0 %v4546_v4, %s4272_s0 }
 0xee0   :  { %v1948_v17 = vpop.permute.xlu0 %1947 }
 0xee1   :  { %v1950_v23 = vadd.f32 %v1948_v17, %v1944_v46 }
 0xee3   :  { %4125 = vtanh.f32 %v1950_v23 }
 0xee4   :  { %v1329_v50 = vpop.permute.xlu0 %1328 }
 0xee5   :  { %3425 = vmatmul.mubr.msk.f32.vlgmr.msra.gmra.mrb[10].mxu1 %vm794_vm3, %v1329_v50 }
 0xee6   :  { %3815 = vmatpush1.bf16.msra.mxu1 %v4647_v51  ;;  %1468 = vmatprep.mubr.f32.mxu1 %v4269_v1 }
 0xee7   :  { %3817 = vmatprep.subr.bf16.mxu1 %v4651_v58 }
 0xee8   :  { %v1716_v52 = vpop.permute.xlu0 %1715 }
 0xeea   :  { %3819 = vmatpush1.bf16.msra.mxu1 %v4654_v60 }
 0xeeb   :  { %3837 = vmatprep.subr.bf16.mxu1 %v4642_v43 }
 0xeed   :  { %v4126_v57 = vpop.eup %4125  ;;  %3426 = vmatmul.mubr.msk.f32.vlgmr.msra.gmra.mrb[10].mxu1 %vm794_vm3, %v4596_v56  ;;  %v145_v56 = vld [vmem:[#allocation7] sm:$0xff] }
 0xeee   :  { %3839 = vmatpush1.bf16.msra.mxu1 %v4647_v51  ;;  %v1952_v4 = vmul.f32 %v4126_v57, %v1943_v16  ;;  %1635 = vmatprep.mubr.f32.mxu1 %v4269_v1  ;;  %v4798_v24 = vpack.c.bf16 %v146_v36, %v145_v56 }
 0xeef   :  { %3841 = vmatprep.subr.bf16.mxu1 %v4651_v58 }
 0xef0   :  { %1954 = vrot.lane.b32.xlu1 %v1952_v4, %s4271_s3  ;;  %3960 = vmatpush3.bf16.msra.mxu0 %v4798_v24 }
 0xef1   :  { %3961 = vmatprep.subr.bf16.mxu0 %v4273_v30 }
 0xef2   :  { %3843 = vmatpush1.bf16.msra.mxu1 %v4654_v60 }
 0xef3   :  { %3845 = vmatprep.subr.bf16.mxu1 %v4698_v42 }
 0xef4   :  { %2104 = vrot.lane.b32.xlu1 %v1952_v4, %s4272_s0  ;;  %3963 = vmatpush3.bf16.msra.mxu0 %v4807_v48 }
 0xef5   :  { %3428 = vmatmul.mubr.msk.f32.vlgmr.msra.gmra.mrb[12].mxu1 %vm794_vm3, %v4735_v22  ;;  %3964 = vmatprep.subr.bf16.mxu0 %v4273_v30 }
 0xef6   :  { %3847 = vmatpush1.bf16.msra.mxu1 %v4700_v44  ;;  %1709 = vmatprep.mubr.f32.mxu1 %v4269_v1 }
 0xef7   :  { %3849 = vmatprep.subr.bf16.mxu1 %v4707_v54 }
 0xefa   :  { %3851 = vmatpush1.bf16.msra.mxu1 %v4709_v62 }
 0xefb   :  { %3853 = vmatprep.subr.bf16.mxu1 %v4698_v42 }
 0xefd   :  { %3429 = vmatmul.mubr.msk.f32.vlgmr.msra.gmra.mrb[12].mxu1 %vm794_vm3, %v1642_v31 }
 0xefe   :  { %3855 = vmatpush1.bf16.msra.mxu1 %v4700_v44  ;;  %1783 = vmatprep.mubr.f32.mxu1 %v4269_v1 }
 0xeff   :  { %3857 = vmatprep.subr.bf16.mxu1 %v4707_v54 }
 0xf02   :  { %3859 = vmatpush1.bf16.msra.mxu1 %v4709_v62 }
 0xf03   :  { %3861 = vmatprep.subr.bf16.mxu1 %v4642_v43 }
 0xf05   :  { %3430 = vmatmul.mubr.msk.f32.vlgmr.msra.gmra.mrb[14].mxu1 %vm794_vm3, %v1716_v52 }
 0xf06   :  { %3863 = vmatpush1.bf16.msra.mxu1 %v4647_v51  ;;  %1855 = vmatprep.mubr.f32.mxu1 %v4269_v1 }
 0xf07   :  { %3865 = vmatprep.subr.bf16.mxu1 %v4651_v58 }
 0xf0a   :  { %3867 = vmatpush1.bf16.msra.mxu1 %v4654_v60 }
 0xf0b   :  { %3885 = vmatprep.subr.bf16.mxu1 %v4642_v43 }
 0xf0d   :  { %3431 = vmatmul.mubr.msk.f32.vlgmr.msra.gmra.mrb[14].mxu1 %vm794_vm3, %v4573_v29  ;;  %v2030_v29 = vpop.permute.xlu0 %2029 }
 0xf0e   :  { %3887 = vmatpush1.bf16.msra.mxu1 %v4647_v51  ;;  %2022 = vmatprep.mubr.f32.mxu1 %v4269_v1 }
 0xf0f   :  { %3889 = vmatprep.subr.bf16.mxu1 %v4651_v58 }
 0xf12   :  { %3891 = vmatpush1.bf16.msra.mxu1 %v4654_v60 }
 0xf13   :  { %3893 = vmatprep.subr.bf16.mxu1 %v4698_v42 }
 0xf62   :  { %v1955_v53 = vpop.permute.xlu1 %1954 }
 0xf63   :  { %3433 = vmatmul.mubr.msk.f32.vlgmr.msra.gmra.mrb[16].mxu1 %vm794_vm3, %v1955_v53 }
 0xf64   :  { %3895 = vmatpush1.bf16.msra.mxu1 %v4700_v44  ;;  %2097 = vmatprep.mubr.f32.mxu1 %v4269_v1 }
 0xf65   :  { %3897 = vmatprep.subr.bf16.mxu1 %v4707_v54 }
 0xf66   :  { %v2105_v59 = vpop.permute.xlu1 %2104 }
 0xf68   :  { %3899 = vmatpush1.bf16.msra.mxu1 %v4709_v62 }
 0xf69   :  { %3901 = vmatprep.subr.bf16.mxu1 %v4698_v42 }
 0xf6b   :  { %3434 = vmatmul.mubr.msk.f32.vlgmr.msra.gmra.mrb[16].mxu1 %vm794_vm3, %v2030_v29 }
 0xf6c   :  { %3903 = vmatpush1.bf16.msra.mxu1 %v4700_v44  ;;  %2172 = vmatprep.mubr.f32.mxu1 %v4269_v1 }
 0xf6d   :  { %3905 = vmatprep.subr.bf16.mxu1 %v4707_v54 }
 0xf70   :  { %3907 = vmatpush1.bf16.msra.mxu1 %v4709_v62  ;;  %v4879_v62 = vsel %vm110_vm7, 0.0, %v4270_v49 }
 0xf71   :  { %3909 = vmatprep.subr.bf16.mxu1 %v4642_v43 }
 0xf73   :  { %3435 = vmatmul.mubr.msk.f32.vlgmr.msra.gmra.mrb[18].mxu1 %vm794_vm3, %v2105_v59 }
 0xf74   :  { %3911 = vmatpush1.bf16.msra.mxu1 %v4647_v51  ;;  %2244 = vmatprep.mubr.f32.mxu1 %v4269_v1  ;;  %v4869_v51 = vsel %vm110_vm7, 1.0, %v4270_v49 }
 0xf75   :  { %3913 = vmatprep.subr.bf16.mxu1 %v4651_v58  ;;  %v4874_v58 = vld [vmem:[%s5048_s6] ss:$0 sm:$0xff] }
 0xf78   :  { %3915 = vmatpush1.bf16.msra.mxu1 %v4654_v60 }
 0xf79   :  { %3916 = vmatprep.subr.bf16.mxu1 %v4273_v30 }
 0xf7b   :  { %3436 = vmatmul.mubr.msk.f32.vlgmr.msra.gmra.mrb[18].mxu1 %vm794_vm3, %v4550_v5 }
 0xf7c   :  { %3918 = vmatpush3.bf16.msra.mxu1 %v4798_v24  ;;  %3524 = vmatprep.mubr.msk.f32.mxu1 %vm4274_vm4, %v4269_v1 }
 0xf7d   :  { %3919 = vmatprep.subr.bf16.mxu1 %v4273_v30 }
 0xf80   :  { %3921 = vmatpush3.bf16.msra.mxu1 %v4807_v48 }
 0xf81   :  { %3922 = vmatprep.subr.bf16.mxu1 %v4273_v30 }
 0xf83   :  { %3525 = vmatmul.mubr.f32.vlgmr.msra.gmra.mrb[18].mxu1 %v4269_v1 }
 0xf84   :  { %3924 = vmatpush3.bf16.msra.mxu1 %v4798_v24  ;;  %3535 = vmatprep.mubr.msk.f32.mxu1 %vm4274_vm4, %v4269_v1 }
 0xf85   :  { %3925 = vmatprep.subr.bf16.mxu1 %v4273_v30 }
 0xf88   :  { %3927 = vmatpush3.bf16.msra.mxu1 %v4807_v48 }
 0xf89   :  { %3928 = vmatprep.subr.bf16.mxu1 %v4273_v30 }
0x103e   :  { %v4862_v5 = vpop.f32.mrb[16].mxu1 }
0x103f   :  { %v4864_v43 = vpop.f32.mrb[17].mxu1 }
0x1056   :  { %v2325_v60 = vpop.f32.mrb[18].mxu1 }
0x1057   :  { %v4022_v42 = vadd.f32 %v4874_v58, %v2325_v60  ;;  %v3526_v44 = vpop.f32.mrb[19].mxu1 }
0x1059   :  { %v2330_v54 = vmul.f32 %v4022_v42, %v4869_v51 }
0x105b   :  { %4127 = vtanh.f32 %v2330_v54 }
0x1065   :  { %v4128_v61 = vpop.eup %4127 }
0x1066   :  { %v2332_v40 = vmul.f32 %v4128_v61, %v4869_v51 }
0x1068   :  { %v2333_v63 = vadd.f32 %v2332_v40, %v4879_v62 }
0x106a   :  { %2336 = vrot.lane.b32.xlu0 %v2333_v63, %s4271_s3  ;;  %v2334_v6 = vmul.f32 0.0, %v2333_v63 }
0x10dc   :  { %v2337_v0 = vpop.permute.xlu0 %2336 }
0x10dd   :  { %v2339_v3 = vmul.f32 %v2337_v0, %v2333_v63 }
0x10df   :  { %2341 = vrot.lane.b32.xlu1 %v2339_v3, %s4272_s0 }
0x1151   :  { %v2342_v7 = vpop.permute.xlu1 %2341 }
0x1152   :  { %v2344_v8 = vadd.f32 %v2342_v7, %v2334_v6 }
0x1154   :  { %4129 = vtanh.f32 %v2344_v8 }
0x115e   :  { %v4130_v9 = vpop.eup %4129 }
0x115f   :  { %2347 = vrot.lane.b32.xlu0 %v4130_v9, %s4271_s3 }
0x11d1   :  { %v2348_v10 = vpop.permute.xlu0 %2347 }
0x11d2   :  { %v2350_v49 = vmul.f32 %v2348_v10, %v2333_v63 }
0x11d4   :  { %2353 = vrot.lane.b32.xlu1 %v2350_v49, %s4272_s0 }
0x1246   :  { %v2354_v11 = vpop.permute.xlu1 %2353 }
0x1247   :  { %3536 = vmatmul.mubr.msk.f32.vlgmr.msra.gmra.mrb[14].mxu1 %vm794_vm3, %v2354_v11 }
0x1248   :  { %3930 = vmatpush3.bf16.msra.mxu1 %v4798_v24  ;;  %3546 = vmatprep.mubr.msk.f32.mxu1 %vm4274_vm4, %v4269_v1 }
0x1249   :  { %3931 = vmatprep.subr.bf16.mxu1 %v4273_v30 }
0x124c   :  { %3933 = vmatpush3.bf16.msra.mxu1 %v4807_v48 }
0x124d   :  { %3934 = vmatprep.subr.bf16.mxu1 %v4273_v30 }
0x131a   :  { %v2423_v13 = vpop.f32.mrb[14].mxu1 }
0x131b   :  { %v4021_v14 = vadd.f32 %v4874_v58, %v2423_v13  ;;  %v3537_v15 = vpop.f32.mrb[15].mxu1 }
0x131d   :  { %v2428_v19 = vmul.f32 %v4021_v14, %v4869_v51 }
0x131f   :  { %4131 = vtanh.f32 %v2428_v19 }
0x1329   :  { %v4132_v20 = vpop.eup %4131 }
0x132a   :  { %v2430_v21 = vmul.f32 %v4132_v20, %v4869_v51 }
0x132c   :  { %v2431_v22 = vadd.f32 %v2430_v21, %v4879_v62 }
0x132e   :  { %2434 = vrot.lane.b32.xlu0 %v2431_v22, %s4271_s3  ;;  %v2432_v55 = vmul.f32 %v2431_v22, %v2344_v8 }
0x13a0   :  { %v2435_v12 = vpop.permute.xlu0 %2434 }
0x13a1   :  { %v2437_v28 = vmul.f32 %v2435_v12, %v2431_v22 }
0x13a3   :  { %2439 = vrot.lane.b32.xlu1 %v2437_v28, %s4272_s0 }
0x1415   :  { %v2440_v18 = vpop.permute.xlu1 %2439 }
0x1416   :  { %v2442_v2 = vadd.f32 %v2440_v18, %v2432_v55 }
0x1418   :  { %4133 = vtanh.f32 %v2442_v2 }
0x1422   :  { %v4134_v25 = vpop.eup %4133 }
0x1423   :  { %2445 = vrot.lane.b32.xlu0 %v4134_v25, %s4271_s3 }
0x1495   :  { %v2446_v26 = vpop.permute.xlu0 %2445 }
0x1496   :  { %v2448_v27 = vmul.f32 %v2446_v26, %v2431_v22 }
0x1498   :  { %2451 = vrot.lane.b32.xlu1 %v2448_v27, %s4272_s0 }
0x150a   :  { %v2452_v32 = vpop.permute.xlu1 %2451 }
0x150b   :  { %3547 = vmatmul.mubr.msk.f32.vlgmr.msra.gmra.mrb[10].mxu1 %vm794_vm3, %v2452_v32 }
0x150c   :  { %3936 = vmatpush3.bf16.msra.mxu1 %v4798_v24  ;;  %3557 = vmatprep.mubr.msk.f32.mxu1 %vm4274_vm4, %v4269_v1 }
0x150d   :  { %3937 = vmatprep.subr.bf16.mxu1 %v4273_v30 }
0x1510   :  { %3939 = vmatpush3.bf16.msra.mxu1 %v4807_v48 }
0x1511   :  { %3940 = vmatprep.subr.bf16.mxu1 %v4273_v30 }
0x15de   :  { %v2521_v33 = vpop.f32.mrb[10].mxu1 }
0x15df   :  { %v4019_v34 = vadd.f32 %v4874_v58, %v2521_v33  ;;  %v3548_v37 = vpop.f32.mrb[11].mxu1 }
0x15e1   :  { %v2526_v38 = vmul.f32 %v4019_v34, %v4869_v51 }
0x15e3   :  { %4135 = vtanh.f32 %v2526_v38 }
0x15ed   :  { %v4136_v39 = vpop.eup %4135 }
0x15ee   :  { %v2528_v41 = vmul.f32 %v4136_v39, %v4869_v51 }
0x15f0   :  { %v2529_v16 = vadd.f32 %v2528_v41, %v4879_v62 }
0x15f2   :  { %2532 = vrot.lane.b32.xlu0 %v2529_v16, %s4271_s3  ;;  %v2530_v17 = vmul.f32 %v2529_v16, %v2442_v2 }
0x1664   :  { %v2533_v45 = vpop.permute.xlu0 %2532 }
0x1665   :  { %v2535_v46 = vmul.f32 %v2533_v45, %v2529_v16 }
0x1667   :  { %2537 = vrot.lane.b32.xlu1 %v2535_v46, %s4272_s0 }
0x16d9   :  { %v2538_v23 = vpop.permute.xlu1 %2537 }
0x16da   :  { %v2540_v50 = vadd.f32 %v2538_v23, %v2530_v17 }
0x16dc   :  { %4137 = vtanh.f32 %v2540_v50 }
0x16e6   :  { %v4138_v57 = vpop.eup %4137 }
0x16e7   :  { %2543 = vrot.lane.b32.xlu0 %v4138_v57, %s4271_s3 }
0x1759   :  { %v2544_v4 = vpop.permute.xlu0 %2543 }
0x175a   :  { %v2546_v56 = vmul.f32 %v2544_v4, %v2529_v16 }
0x175c   :  { %2549 = vrot.lane.b32.xlu1 %v2546_v56, %s4272_s0 }
0x17ce   :  { %v2550_v36 = vpop.permute.xlu1 %2549 }
0x17cf   :  { %3558 = vmatmul.mubr.msk.f32.vlgmr.msra.gmra.mrb[6].mxu1 %vm794_vm3, %v2550_v36 }
0x17d0   :  { %3942 = vmatpush3.bf16.msra.mxu1 %v4798_v24  ;;  %3568 = vmatprep.mubr.msk.f32.mxu1 %vm4274_vm4, %v4269_v1 }
0x17d1   :  { %3943 = vmatprep.subr.bf16.mxu1 %v4273_v30 }
0x17d4   :  { %3945 = vmatpush3.bf16.msra.mxu1 %v4807_v48 }
0x17d5   :  { %3946 = vmatprep.subr.bf16.mxu1 %v4273_v30 }
0x18a2   :  { %v2619_v31 = vpop.f32.mrb[6].mxu1 }
0x18a3   :  { %v4017_v35 = vadd.f32 %v4874_v58, %v2619_v31  ;;  %v3559_v47 = vpop.f32.mrb[7].mxu1 }
0x18a5   :  { %v2624_v52 = vmul.f32 %v4017_v35, %v4869_v51 }
0x18a7   :  { %4139 = vtanh.f32 %v2624_v52 }
0x18b1   :  { %v4140_v53 = vpop.eup %4139 }
0x18b2   :  { %v2626_v29 = vmul.f32 %v4140_v53, %v4869_v51 }
0x18b4   :  { %v2627_v59 = vadd.f32 %v2626_v29, %v4879_v62 }
0x18b6   :  { %2630 = vrot.lane.b32.xlu0 %v2627_v59, %s4271_s3  ;;  %v2628_v44 = vmul.f32 %v2627_v59, %v2540_v50 }
0x1928   :  { %v2631_v60 = vpop.permute.xlu0 %2630 }
0x1929   :  { %v2633_v42 = vmul.f32 %v2631_v60, %v2627_v59  ;;  %v150_v60 = vld [vmem:[#allocation7 + $0x18] sm:$0xff] }
0x192b   :  { %2635 = vrot.lane.b32.xlu1 %v2633_v42, %s4272_s0 }
0x199d   :  { %v2636_v54 = vpop.permute.xlu1 %2635 }
0x199e   :  { %v2638_v61 = vadd.f32 %v2636_v54, %v2628_v44  ;;  %v151_v44 = vld [vmem:[#allocation7 + $0x28] sm:$0xff]  ;;  %v152_v54 = vld [vmem:[#allocation7 + $0x38] sm:$0xff] }
0x19a0   :  { %4141 = vtanh.f32 %v2638_v61 }
0x19aa   :  { %v4142_v40 = vpop.eup %4141 }
0x19ab   :  { %2641 = vrot.lane.b32.xlu0 %v4142_v40, %s4271_s3  ;;  %v3968_v40 = vpack.c.bf16 %v152_v54, %v151_v44 }
0x1a1d   :  { %v2642_v63 = vpop.permute.xlu0 %2641 }
0x1a1e   :  { %v2644_v0 = vmul.f32 %v2642_v63, %v2627_v59  ;;  %v149_v59 = vld [vmem:[#allocation7 + $0x8] sm:$0xff]  ;;  %v2939_v63 = vadd.f32 %v4874_v58, %v4862_v5 }
0x1a1f   :  { %v3965_v42 = vpack.c.bf16 %v150_v60, %v149_v59  ;;  %v3309_v59 = vld [vmem:[%s5051_s9 + $0x30] sm:$0xff]  ;;  %v3310_v60 = vld [vmem:[%s5051_s9 + $0x38] sm:$0xff] }
0x1a20   :  { %2647 = vrot.lane.b32.xlu1 %v2644_v0, %s4272_s0 }
0x1a92   :  { %v2648_v3 = vpop.permute.xlu1 %2647 }
0x1a93   :  { %3569 = vmatmul.mubr.msk.f32.vlgmr.msra.gmra.mrb[4].mxu1 %vm794_vm3, %v2648_v3 }
0x1a94   :  { %3948 = vmatpush3.bf16.msra.mxu1 %v4798_v24  ;;  %3579 = vmatprep.mubr.msk.f32.mxu1 %vm4274_vm4, %v4269_v1 }
0x1a95   :  { %3949 = vmatprep.subr.bf16.mxu1 %v4273_v30 }
0x1a98   :  { %3951 = vmatpush3.bf16.msra.mxu1 %v4807_v48 }
0x1a99   :  { %3952 = vmatprep.subr.bf16.mxu1 %v4273_v30 }
0x1b66   :  { %v2717_v6 = vpop.f32.mrb[4].mxu1 }
0x1b67   :  { %v4016_v7 = vadd.f32 %v4874_v58, %v2717_v6  ;;  %v3570_v8 = vpop.f32.mrb[5].mxu1 }
0x1b68   :  { %v3445_v8 = vld [vmem:[%s5048_s6 + $0x1] ss:$0 sm:$0xff] }
0x1b69   :  { %v2722_v9 = vmul.f32 %v4016_v7, %v4869_v51 }
0x1b6b   :  { %4143 = vtanh.f32 %v2722_v9  ;;  %v3043_v9 = vadd.f32 %v3445_v8, %v4864_v43 }
0x1b75   :  { %v4144_v10 = vpop.eup %4143 }
0x1b76   :  { %v2724_v49 = vmul.f32 %v4144_v10, %v4869_v51 }
0x1b78   :  { %v2725_v11 = vadd.f32 %v2724_v49, %v4879_v62 }
0x1b7a   :  { %2728 = vrot.lane.b32.xlu0 %v2725_v11, %s4271_s3  ;;  %v2726_v15 = vmul.f32 %v2725_v11, %v2638_v61 }
0x1bec   :  { %v2729_v13 = vpop.permute.xlu0 %2728 }
0x1bed   :  { %v2731_v14 = vmul.f32 %v2729_v13, %v2725_v11 }
0x1bef   :  { %2733 = vrot.lane.b32.xlu1 %v2731_v14, %s4272_s0 }
0x1c61   :  { %v2734_v19 = vpop.permute.xlu1 %2733 }
0x1c62   :  { %v2736_v20 = vadd.f32 %v2734_v19, %v2726_v15 }
0x1c64   :  { %4145 = vtanh.f32 %v2736_v20 }
0x1c6e   :  { %v4146_v21 = vpop.eup %4145 }
0x1c6f   :  { %2739 = vrot.lane.b32.xlu0 %v4146_v21, %s4271_s3 }
0x1ce1   :  { %v2740_v22 = vpop.permute.xlu0 %2739 }
0x1ce2   :  { %v2742_v12 = vmul.f32 %v2740_v22, %v2725_v11 }
0x1ce4   :  { %2745 = vrot.lane.b32.xlu1 %v2742_v12, %s4272_s0 }
0x1d56   :  { %v2746_v28 = vpop.permute.xlu1 %2745 }
0x1d57   :  { %3580 = vmatmul.mubr.msk.f32.vlgmr.msra.gmra.mrb[8].mxu1 %vm794_vm3, %v2746_v28 }
0x1d58   :  { %3954 = vmatpush3.bf16.msra.mxu1 %v4798_v24  ;;  %3590 = vmatprep.mubr.msk.f32.mxu1 %vm4274_vm4, %v4269_v1 }
0x1d59   :  { %3955 = vmatprep.subr.bf16.mxu1 %v4273_v30 }
0x1d5c   :  { %3957 = vmatpush3.bf16.msra.mxu1 %v4807_v48 }
0x1e2a   :  { %v2815_v55 = vpop.f32.mrb[8].mxu1 }
0x1e2b   :  { %v4018_v18 = vadd.f32 %v4874_v58, %v2815_v55  ;;  %v3581_v2 = vpop.f32.mrb[9].mxu1 }
0x1e2d   :  { %v2820_v25 = vmul.f32 %v4018_v18, %v4869_v51 }
0x1e2f   :  { %4147 = vtanh.f32 %v2820_v25 }
0x1e39   :  { %v4148_v26 = vpop.eup %4147 }
0x1e3a   :  { %v2822_v27 = vmul.f32 %v4148_v26, %v4869_v51 }
0x1e3c   :  { %v2823_v32 = vadd.f32 %v2822_v27, %v4879_v62 }
0x1e3e   :  { %2826 = vrot.lane.b32.xlu0 %v2823_v32, %s4271_s3  ;;  %v2824_v34 = vmul.f32 %v2823_v32, %v2736_v20 }
0x1eb0   :  { %v2827_v24 = vpop.permute.xlu0 %2826 }
0x1eb1   :  { %v2829_v33 = vmul.f32 %v2827_v24, %v2823_v32 }
0x1eb3   :  { %2831 = vrot.lane.b32.xlu1 %v2829_v33, %s4272_s0  ;;  %v3142_v33 = vld [vmem:[#allocation8 + $0x30] sm:$0xff] }
0x1f25   :  { %v2832_v48 = vpop.permute.xlu1 %2831 }
0x1f26   :  { %v2834_v37 = vadd.f32 %v2832_v48, %v2824_v34  ;;  %v3143_v34 = vld [vmem:[#allocation8 + $0x38] sm:$0xff] }
0x1f27   :  { %v3974_v48 = vpack.c.bf16 %v3143_v34, %v3142_v33 }
0x1f28   :  { %4149 = vtanh.f32 %v2834_v37 }
0x1f32   :  { %v4150_v38 = vpop.eup %4149 }
0x1f33   :  { %2837 = vrot.lane.b32.xlu0 %v4150_v38, %s4271_s3 }
0x1fa5   :  { %v2838_v39 = vpop.permute.xlu0 %2837 }
0x1fa6   :  { %v2840_v41 = vmul.f32 %v2838_v39, %v2823_v32 }
0x1fa8   :  { %2843 = vrot.lane.b32.xlu1 %v2840_v41, %s4272_s0 }
0x201a   :  { %v2844_v16 = vpop.permute.xlu1 %2843 }
0x201b   :  { %3591 = vmatmul.mubr.msk.f32.vlgmr.msra.gmra.mrb[12].mxu1 %vm794_vm3, %v2844_v16  ;;  %v3136_v16 = vld [vmem:[#allocation8] sm:$0xff] }
0x20ee   :  { %v2913_v45 = vpop.f32.mrb[12].mxu1 }
0x20ef   :  { %v4020_v46 = vadd.f32 %v4874_v58, %v2913_v45  ;;  %v3592_v17 = vpop.f32.mrb[13].mxu1  ;;  %v3137_v45 = vld [vmem:[#allocation8 + $0x8] sm:$0xff] }
0x20f0   :  { %v3138_v17 = vld [vmem:[#allocation8 + $0x10] sm:$0xff] }
0x20f1   :  { %v2918_v23 = vmul.f32 %v4020_v46, %v4869_v51  ;;  %v3977_v46 = vpack.c.bf16 %v3137_v45, %v3136_v16 }
0x20f3   :  { %4151 = vtanh.f32 %v2918_v23  ;;  %v3139_v23 = vld [vmem:[#allocation8 + $0x18] sm:$0xff] }
0x20fd   :  { %v4152_v50 = vpop.eup %4151 }
0x20fe   :  { %v2920_v57 = vmul.f32 %v4152_v50, %v4869_v51 }
0x2100   :  { %v2921_v4 = vadd.f32 %v2920_v57, %v4879_v62  ;;  %v3980_v57 = vpack.c.bf16 %v3139_v23, %v3138_v17 }
0x2102   :  { %2924 = vrot.lane.b32.xlu0 %v2921_v4, %s4271_s3  ;;  %v2922_v31 = vmul.f32 %v2921_v4, %v2834_v37 }
0x2174   :  { %v2925_v56 = vpop.permute.xlu0 %2924 }
0x2175   :  { %v2927_v36 = vmul.f32 %v2925_v56, %v2921_v4  ;;  %v3304_v56 = vld [vmem:[%s5051_s9 + $0x8] sm:$0xff] }
0x2177   :  { %2929 = vrot.lane.b32.xlu1 %v2927_v36, %s4272_s0 }
0x21e9   :  { %v2930_v35 = vpop.permute.xlu1 %2929 }
0x21ea   :  { %v2932_v47 = vadd.f32 %v2930_v35, %v2922_v31  ;;  %v3305_v35 = vld [vmem:[%s5051_s9 + $0x10] sm:$0xff] }
0x21ec   :  { %4153 = vtanh.f32 %v2932_v47 }
0x21f6   :  { %v4154_v52 = vpop.eup %4153 }
0x21f7   :  { %2935 = vrot.lane.b32.xlu0 %v4154_v52, %s4271_s3 }
0x2269   :  { %v2936_v53 = vpop.permute.xlu0 %2935 }
0x226a   :  { %v2938_v29 = vmul.f32 %v2936_v53, %v2921_v4  ;;  %v3303_v4 = vld [vmem:[%s5051_s9] sm:$0xff] }
0x226b   :  { %v3983_v36 = vpack.c.bf16 %v3304_v56, %v3303_v4  ;;  %v3307_v53 = vld [vmem:[%s5051_s9 + $0x20] sm:$0xff] }
0x226c   :  { %2941 = vrot.lane.b32.xlu1 %v2938_v29, %s4272_s0 }
0x22de   :  { %v2942_v61 = vpop.permute.xlu1 %2941 }
0x22df   :  { %3602 = vmatmul.mubr.msk.f32.vlgmr.msra.gmra.mrb[16].mxu0 %vm794_vm3, %v2942_v61 }
0x22e0   :  { %3966 = vmatpush3.bf16.msra.mxu0 %v3965_v42  ;;  %3612 = vmatprep.mubr.msk.f32.mxu0 %vm4274_vm4, %v4269_v1  ;;  %v3992_v42 = vpack.c.bf16 %v3310_v60, %v3309_v59 }
0x22e1   :  { %3967 = vmatprep.subr.bf16.mxu0 %v4273_v30 }
0x22e4   :  { %3969 = vmatpush3.bf16.msra.mxu0 %v3968_v40  ;;  %v3448_v40 = vld [vmem:[%s5050_s8] ss:$0 sm:$0xff] }
0x22e5   :  { %3970 = vmatprep.subr.bf16.mxu0 %v4273_v30 }
0x22e7   :  { %3613 = vmatmul.mubr.f32.vlgmr.msra.gmra.mrb[18].mxu0 %v4269_v1 }
0x22e8   :  { %3623 = vmatprep.mubr.msk.f32.mxu0 %vm4274_vm4, %v4269_v1 }
0x23b2   :  { %v3011_v0 = vpop.f32.mrb[16].mxu0 }
0x23b3   :  { %v3015_v3 = vadd.f32 %v3011_v0, %v2939_v63  ;;  %v3603_v6 = vpop.f32.mrb[17].mxu0 }
0x23b4   :  { %v3449_v6 = vld [vmem:[#allocation2] ss:$0 sm:$0xff] }
0x23b5   :  { %v3016_v7 = vmul.f32 %v3015_v3, %v4869_v51 }
0x23b7   :  { %4155 = vtanh.f32 %v3016_v7 }
0x23ba   :  { %v3110_v10 = vpop.f32.mrb[18].mxu0 }
0x23bb   :  { %v3114_v49 = vadd.f32 %v3110_v10, %v3043_v9  ;;  %v3614_v11 = vpop.f32.mrb[19].mxu0 }
0x23bd   :  { %v3115_v13 = vmul.f32 %v3114_v49, %v4869_v51 }
0x23bf   :  { %4157 = vtanh.f32 %v3115_v13 }
0x23c1   :  { %v4156_v14 = vpop.eup %4155 }
0x23c2   :  { %v3018_v5 = vmul.f32 %v4156_v14, %v4869_v51 }
0x23c4   :  { %v3019_v58 = vadd.f32 %v3018_v5, %v4879_v62 }
0x23c6   :  { %3022 = vrot.lane.b32.xlu1 %v3019_v58, %s4271_s3  ;;  %v3020_v28 = vmul.f32 %v3019_v58, %v2932_v47  ;;  %v3306_v47 = vld [vmem:[%s5051_s9 + $0x18] sm:$0xff] }
0x23c7   :  { %v3986_v52 = vpack.c.bf16 %v3306_v47, %v3305_v35 }
0x23c9   :  { %v4158_v15 = vpop.eup %4157 }
0x23ca   :  { %v3117_v19 = vmul.f32 %v4158_v15, %v4869_v51  ;;  %v3140_v51 = vld [vmem:[#allocation8 + $0x20] sm:$0xff] }
0x23cc   :  { %v3118_v20 = vadd.f32 %v3117_v19, %v4879_v62  ;;  %v3141_v62 = vld [vmem:[#allocation8 + $0x28] sm:$0xff] }
0x23cd   :  { %v3971_v27 = vpack.c.bf16 %v3141_v62, %v3140_v51 }
0x23ce   :  { %3121 = vrot.lane.b32.xlu0 %v3118_v20, %s4271_s3  ;;  %v3119_v2 = vmul.f32 0.0, %v3118_v20 }
0x23cf   :  { %3972 = vmatpush3.bf16.msra.mxu0 %v3971_v27 }
0x23d0   :  { %3973 = vmatprep.subr.bf16.mxu0 %v4273_v30 }
0x23d3   :  { %3975 = vmatpush3.bf16.msra.mxu0 %v3974_v48 }
0x23d4   :  { %3976 = vmatprep.subr.bf16.mxu0 %v4273_v30 }
0x2438   :  { %v3023_v43 = vpop.permute.xlu1 %3022 }
0x2439   :  { %v3025_v21 = vmul.f32 %v3023_v43, %v3019_v58 }
0x243b   :  { %3027 = vrot.lane.b32.xlu1 %v3025_v21, %s4272_s0 }
0x2440   :  { %v3122_v22 = vpop.permute.xlu0 %3121 }
0x2441   :  { %v3124_v12 = vmul.f32 %v3122_v22, %v3118_v20 }
0x2443   :  { %3126 = vrot.lane.b32.xlu0 %v3124_v12, %s4272_s0 }
0x24ad   :  { %v3028_v55 = vpop.permute.xlu1 %3027 }
0x24ae   :  { %v3030_v18 = vadd.f32 %v3028_v55, %v3020_v28 }
0x24b0   :  { %4159 = vtanh.f32 %v3030_v18 }
0x24b5   :  { %v3127_v25 = vpop.permute.xlu0 %3126 }
0x24b6   :  { %v3129_v26 = vadd.f32 %v3127_v25, %v3119_v2 }
0x24b8   :  { %4161 = vtanh.f32 %v3129_v26 }
0x24ba   :  { %v4160_v32 = vpop.eup %4159 }
0x24bb   :  { %3033 = vrot.lane.b32.xlu1 %v4160_v32, %s4271_s3 }
0x24c2   :  { %v4162_v24 = vpop.eup %4161 }
0x24c3   :  { %3132 = vrot.lane.b32.xlu0 %v4162_v24, %s4271_s3 }
0x252d   :  { %v3034_v37 = vpop.permute.xlu1 %3033 }
0x252e   :  { %v3036_v38 = vmul.f32 %v3034_v37, %v3019_v58 }
0x2530   :  { %3220 = vrot.lane.b32.xlu1 %v3036_v38, %s4272_s0 }
0x2535   :  { %v3133_v39 = vpop.permute.xlu0 %3132 }
0x2536   :  { %v3135_v41 = vmul.f32 %v3133_v39, %v3118_v20 }
0x2538   :  { %3145 = vrot.lane.b32.xlu0 %v3135_v41, %s4272_s0 }
0x25a2   :  { %v3221_v31 = vpop.permute.xlu1 %3220 }
0x25aa   :  { %v3146_v50 = vpop.permute.xlu0 %3145 }
0x25ab   :  { %3624 = vmatmul.mubr.msk.f32.vlgmr.msra.gmra.mrb[20].mxu0 %vm794_vm3, %v3146_v50 }
0x25ac   :  { %3978 = vmatpush3.bf16.msra.mxu0 %v3977_v46  ;;  %3634 = vmatprep.mubr.msk.f32.mxu0 %vm4274_vm4, %v4269_v1 }
0x25ad   :  { %3979 = vmatprep.subr.bf16.mxu0 %v4273_v30 }
0x25b0   :  { %3981 = vmatpush3.bf16.msra.mxu0 %v3980_v57 }
0x25b1   :  { %3982 = vmatprep.subr.bf16.mxu0 %v4273_v30 }
0x25b3   :  { %3635 = vmatmul.mubr.msk.f32.vlgmr.msra.gmra.mrb[22].mxu0 %vm794_vm3, %v3221_v31 }
0x25b4   :  { %3984 = vmatpush3.bf16.msra.mxu0 %v3983_v36  ;;  %3653 = vmatprep.mubr.msk.f32.mxu0 %vm4274_vm4, %v4269_v1  ;;  %v3308_v1 = vld [vmem:[%s5051_s9 + $0x28] sm:$0xff] }
0x25b5   :  { %3985 = vmatprep.subr.bf16.mxu0 %v4273_v30  ;;  %v3989_v29 = vpack.c.bf16 %v3308_v1, %v3307_v53 }
0x25b8   :  { %3987 = vmatpush3.bf16.msra.mxu0 %v3986_v52 }
0x25b9   :  { %3988 = vmatprep.subr.bf16.mxu0 %v4273_v30 }
0x25bc   :  { %3990 = vmatpush3.bf16.msra.mxu0 %v3989_v29 }
0x25bd   :  { %3991 = vmatprep.subr.bf16.mxu0 %v4273_v30 }
0x25c0   :  { %3993 = vmatpush3.bf16.msra.mxu0 %v3992_v42 }
0x267e   :  { %v3215_v44 = vpop.f32.mrb[20].mxu0 }
0x267f   :  { %v3625_v54 = vpop.f32.mrb[21].mxu0 }
0x2686   :  { %v3290_v61 = vpop.f32.mrb[22].mxu0 }
0x2687   :  { %v3291_v63 = vadd.f32 %v3290_v61, %v3215_v44  ;;  %v3636_v0 = vpop.f32.mrb[23].mxu0 }
0x2689   :  { %v3301_v30 = vadd.f32 %v3448_v40, %v3291_v63 }
0x268b   :  { %v3302_v3 = vmax.f32 %v3301_v30, 0.0 }
0x268d   :  { %3654 = vmatmul.mubr.msk.f32.vlgmr.msra.gmra.mrb[24].mxu0 %vm317_vm2, %v3302_v3 }
0x2760   :  { %v3387_v7 = vpop.f32.mrb[24].mxu0 }
0x2761   :  { %v3388_v8 = vadd.f32 %v3449_v6, %v3387_v7  ;;  %v3655_v9 = vpop.f32.mrb[25].mxu0 }
0x2763   :  { %v3451_v10 = vmul.f32 -1.442695, %v3388_v8 }
0x2765   :  { %4163 = vpow2.f32 %v3451_v10 }
0x276f   :  { %v4164_v49 = vpop.eup %4163 }
0x2770   :  { %v3394_v11 = vadd.f32 1.0, %v4164_v49 }
0x2772   :  { %4165 = vrcp.f32 %v3394_v11 }
0x277c   :  { %v4166_v13 = vpop.eup %4165 }
0x277d   :  { %3398 = vst.msk [vmem:[%s5053_s11] sm:$0xff] %vm3397_vm8, %v4166_v13 }
0x277e   :  { %3403 = vsyncpa [#allocation4], 1 }
0x277f   :  { %3404 = vsyncpa [#allocation6], 1 }
0x2780   :  { %3405 = vsyncpa [#allocation9], 1 }

</bundles_post_ra>
